<compile_context>
chip_gen: v7x
topology: tpu7x:2x2x1
jax: 0.10.0
libtpu: 0.0.40
codegen_flags: <defaults>
</compile_context>

<pallas_src>
import jax
import jax.numpy as jnp
from jax import lax
from jax.experimental import pallas as pl
from jax.experimental.pallas import tpu as pltpu


def _round_up(x, m):
    return ((x + m - 1) // m) * m


# --------------------------------------------------------------------------- #
# Kernel
# --------------------------------------------------------------------------- #
def _make_kernel(order_is_zero, *, seq, hidden, tile_v, sw_pad, mxu_dtype):
    f32 = jnp.float32

    def kernel(*refs):
        it = iter(refs)
        xw_ref = next(it)                                  # [1, 1, embed+2h]
        prev_ref = None if order_is_zero else next(it)     # [1, 1, h]
        enc_ref = next(it)                                 # [1, seq, 2h]
        encT_ref = next(it)                                # [1, 2h, seq]
        encidx_ref = next(it)                              # [1, seq, 1] int32
        mask_ref = next(it)                                # [1, 1, seq]
        isdup_ref = next(it)                               # [1, 1, seq]
        lastocc_ref = next(it)                             # [1, 1, seq]
        same_ref = next(it)                                # [1, seq, seq]
        idxn_ref = next(it)                                # [1, 1, seq]
        wih_ref = next(it)                                 # [embed+2h, 3h]
        bih_ref = next(it)                                 # [1, 3h]
        whh_ref = next(it)                                 # [h, 3h]
        bhh_ref = next(it)                                 # [1, 3h]
        wo_ref = next(it)                                  # [h, tile_v]
        wob_ref = next(it)                                 # [1, tile_v]
        oov_ref = next(it)                                 # [1, tile_v]
        wc_ref = next(it)                                  # [h, 2h]
        wcb_ref = next(it)                                 # [h, 1]
        if order_is_zero:
            wsT_ref = next(it)                             # [2h, h]
            wsb_ref = next(it)                             # [1, h]
        out_ref = next(it)                                 # [1, 1, tile_v]
        sw_ref = next(it)                                  # [1, 1, sw_pad]
        state_sc = next(it)                                # [1, h]
        scorec_sc = next(it)                               # [1, seq]
        m_sc = next(it)                                    # [1, 1]
        l_sc = next(it)                                    # [1, 1]
        attn_sc = next(it)                                 # [1, seq]
        sg_sc = next(it)                                   # [nvt, 1, tile_v]

        i = pl.program_id(1)       # pass index (0: stats, 1: emit)
        j = pl.program_id(2)       # vocab tile index

        def mxdot(a, bm):
            return jnp.dot(a.astype(mxu_dtype), bm.astype(mxu_dtype),
                           preferred_element_type=f32)

        # -------- pass 0, first tile: GRU step + copy scores + stat init ----
        @pl.when((i == 0) & (j == 0))
        def _():
            xw = xw_ref[0]                                  # [1, embed+2h]
            if order_is_zero:
                enc_last = enc_ref[0][seq - 1:seq, :]       # [1, 2h]
                prev = mxdot(enc_last, wsT_ref[...]) + wsb_ref[...]
            else:
                prev = prev_ref[0]                          # [1, h]
            # fused GRU input projection: one dot against the full wih_T
            gi = mxdot(xw, wih_ref[...]) + bih_ref[...]     # [1, 3h]
            gh = mxdot(prev, whh_ref[...]) + bhh_ref[...]   # [1, 3h]
            r = jax.nn.sigmoid(gi[:, :hidden] + gh[:, :hidden])
            z = jax.nn.sigmoid(gi[:, hidden:2 * hidden]
                               + gh[:, hidden:2 * hidden])
            n = jnp.tanh(gi[:, 2 * hidden:] + r * gh[:, 2 * hidden:])
            state = (1.0 - z) * n + z * prev                # [1, h]
            state_sc[...] = state

            # copy scores in transposed form -> no in-kernel reshape/transpose
            scT = jnp.tanh(mxdot(wc_ref[...], encT_ref[0]) + wcb_ref[...])
            score_c = jnp.tanh(mxdot(state, scT)) + mask_ref[0]   # [1, seq]
            scorec_sc[...] = score_c
            m0 = jnp.max(score_c, axis=-1, keepdims=True)
            m_sc[...] = m0
            l_sc[...] = jnp.sum(jnp.exp(score_c - m0), axis=-1, keepdims=True)

        # -------- pass 0, every tile: score_g tile + online softmax stats ---
        @pl.when(i == 0)
        def _():
            sg = mxdot(state_sc[...], wo_ref[...]) + wob_ref[...]  # [1, tv]
            sg_sc[j] = sg
            m_prev = m_sc[...]
            m_new = jnp.maximum(m_prev, jnp.max(sg, axis=-1, keepdims=True))
            l_sc[...] = (l_sc[...] * jnp.exp(m_prev - m_new)
                         + jnp.sum(jnp.exp(sg - m_new), axis=-1, keepdims=True))
            m_sc[...] = m_new

        # -------- pass 1, first tile: prob_c, dup handling, state/context ---
        @pl.when((i == 1) & (j == 0))
        def _():
            inv = pl.reciprocal(l_sc[...], approx=True)            # [1, 1]
            prob_c = jnp.exp(scorec_sc[...] - m_sc[...]) * inv     # [1, seq]
            # duplicate-token handling via precomputed pair-equality matrix
            row_sum_same = mxdot(prob_c, same_ref[0])              # [1, seq]
            is_dup = isdup_ref[0]
            attn = prob_c * (1.0 - is_dup) + is_dup * prob_c * row_sum_same
            # PyTorch `a[idx] += v` scatter is non-accumulating -> keep only
            # the last occurrence of each source token per row.
            attn_sc[...] = attn * lastocc_ref[0]
            # attentional context for the next decode step
            attn2 = prob_c * idxn_ref[0]                           # [1, seq]
            weighted = mxdot(attn2, enc_ref[0])                    # [1, 2h]
            parts = [state_sc[...], weighted]
            if sw_pad > 3 * hidden:
                parts.append(jnp.zeros((1, sw_pad - 3 * hidden), f32))
            sw_ref[...] = jnp.concatenate(parts, axis=1)[None]     # lane-dense

        # -------- pass 1, every tile: final lane-dense output tile -----------
        @pl.when(i == 1)
        def _():
            inv = pl.reciprocal(l_sc[...], approx=True)
            prob_g = jnp.exp(sg_sc[j] - m_sc[...]) * inv           # [1, tv]
            col = j * tile_v + lax.broadcasted_iota(jnp.int32, (1, tile_v), 1)
            onehot = (encidx_ref[0] == col).astype(mxu_dtype)      # [seq, tv]
            pc2g = jnp.dot(attn_sc[...].astype(mxu_dtype), onehot,
                           preferred_element_type=f32)             # [1, tv]
            out_ref[...] = (prob_g + oov_ref[...] + pc2g)[None]

    return kernel


# --------------------------------------------------------------------------- #
# Parameters (PyTorch layout) and one-time preparation
# --------------------------------------------------------------------------- #
def init_params(key, vocab_size, embed_size, hidden_size):
    ks = jax.random.split(key, 11)
    h = hidden_size

    def u(k, shape, scale=0.1):
        return jax.random.uniform(k, shape, jnp.float32, -1.0, 1.0) * scale

    return {
        "embed": u(ks[0], (vocab_size, embed_size)),
        "w_ih": u(ks[1], (3 * h, embed_size + 2 * h)),   # GRU weight_ih_l0
        "w_hh": u(ks[2], (3 * h, h)),                    # GRU weight_hh_l0
        "b_ih": u(ks[3], (3 * h,)),
        "b_hh": u(ks[4], (3 * h,)),
        "ws_w": u(ks[5], (h, 2 * h)),
        "ws_b": u(ks[6], (h,)),
        "wo_w": u(ks[7], (vocab_size, h)),
        "wo_b": u(ks[8], (vocab_size,)),
        "wc_w": u(ks[9], (h, 2 * h)),
        "wc_b": u(ks[10], (h,)),
    }


def prepare_params(params, *, vocab_size, embed_size, hidden_size,
                   max_oovs=12, tile_v=None, mxu_dtype=jnp.float32):
    """Once per model: transpose weights, pad Wo to a 128-multiple vocab.

    Set mxu_dtype=jnp.bfloat16 on v6e/v7x to halve weight DMA bytes (MXU
    operands only; accumulation stays f32)."""
    f32 = jnp.float32
    h = hidden_size
    v_ext = vocab_size + max_oovs
    if tile_v is None:
        tile_v = min(512, _round_up(v_ext, 128))
    assert tile_v % 128 == 0
    padded_v = _round_up(v_ext, tile_v)

    wo_T = jnp.zeros((h, padded_v), f32).at[:, :vocab_size].set(
        params["wo_w"].T.astype(f32))
    # pad / oov columns get a huge negative bias -> exactly zero softmax mass
    wo_b = jnp.full((1, padded_v), -1e30, f32).at[0, :vocab_size].set(
        params["wo_b"].astype(f32))
    oov = jnp.zeros((1, padded_v), f32).at[0, vocab_size:v_ext].set(1e-4)

    return {
        "embed": params["embed"].astype(f32),
        "wih_T": params["w_ih"].T.astype(f32),
        "bih": params["b_ih"].astype(f32)[None, :],
        "whh_T": params["w_hh"].T.astype(f32),
        "bhh": params["b_hh"].astype(f32)[None, :],
        "ws_T": params["ws_w"].T.astype(f32),
        "ws_b": params["ws_b"].astype(f32)[None, :],
        "wo_T": wo_T, "wo_b": wo_b, "oov": oov,
        "wc": params["wc_w"].astype(f32),
        "wc_b_col": params["wc_b"].astype(f32)[:, None],
        # static config
        "vocab_size": vocab_size, "embed_size": embed_size,
        "hidden_size": h, "max_oovs": max_oovs,
        "tile_v": tile_v, "padded_v": padded_v,
        "mxu_dtype": mxu_dtype,
    }


def precompute_encoder(encoded, encoded_idx, *, extended_vocab_size):
    """Once per source sequence: everything that only depends on the encoder."""
    f32 = jnp.float32
    enc = encoded.astype(f32)                               # [b, seq, 2h]
    idx = encoded_idx.astype(jnp.int32)                     # [b, seq]
    b, seq = idx.shape

    enc_mask = jnp.where(idx == 0, -1000.0, 0.0).astype(f32)[:, None, :]

    # batch-global duplicate detection (== Counter over the flattened ids)
    counts = jnp.zeros((extended_vocab_size,), jnp.int32).at[
        idx.reshape(-1)].add(1)
    is_dup = (counts[idx] > 1).astype(f32)[:, None, :]      # [b, 1, seq]

    # per-row pair-equality matrix and last-occurrence mask
    same = idx[:, :, None] == idx[:, None, :]               # [b, seq, seq]
    pos = jnp.arange(seq, dtype=jnp.int32)
    later = pos[None, :] > pos[:, None]                     # [seq, seq]
    later_same = jnp.sum(jnp.logical_and(same, later[None]).astype(jnp.int32),
                         axis=2)
    last_occ = (later_same == 0).astype(f32)[:, None, :]    # [b, 1, seq]

    return {
        "enc": enc,
        "encT": jnp.swapaxes(enc, 1, 2),                    # [b, 2h, seq]
        "encidx_col": idx[:, :, None],                      # [b, seq, 1]
        "encidx": idx,                                      # [b, seq]
        "enc_mask": enc_mask,
        "is_dup": is_dup,
        "last_occ": last_occ,
        "same": same.astype(f32),
    }


# --------------------------------------------------------------------------- #
# One decode step
# --------------------------------------------------------------------------- #
def copy_decoder_forward(prepped, encpack, input_idx, prev_state, weighted,
                         order):
    f32 = jnp.float32
    h = prepped["hidden_size"]
    embed = prepped["embed_size"]
    vocab = prepped["vocab_size"]
    max_oovs = prepped["max_oovs"]
    tile_v = prepped["tile_v"]
    padded_v = prepped["padded_v"]
    mxu_dtype = prepped["mxu_dtype"]
    v_ext = vocab + max_oovs
    two_h = 2 * h
    nvt = padded_v // tile_v

    enc = encpack["enc"]
    b, seq, _ = enc.shape
    sw_pad = _round_up(3 * h, 128)

    # per-step glue (embedding gather + tiny elementwise); heavy work in-kernel
    emb_x = prepped["embed"][input_idx]                      # [b, embed]
    if order == 0:
        wgt = jnp.zeros((b, two_h), f32)
    else:
        wgt = weighted.reshape(b, two_h).astype(f32)
    xw = jnp.concatenate([emb_x, wgt], axis=1)[:, None, :]   # [b,1,embed+2h]

    eqf = (encpack["encidx"] == input_idx[:, None]).astype(f32)   # [b, seq]
    rs = jnp.sum(eqf, axis=1, keepdims=True)
    idx_norm = (eqf / jnp.where(rs > 1.0, rs, 1.0))[:, None, :]   # [b, 1, seq]

    order_is_zero = (order == 0)

    def row3(d1, d2):   # per-batch-row block (last two dims == full dims)
        return pl.BlockSpec((1, d1, d2), lambda bi, i, j: (bi, 0, 0))

    def const2(d1, d2):  # whole 2-D weight, resident for the full grid
        return pl.BlockSpec((d1, d2), lambda bi, i, j: (0, 0))

    args = [xw]
    in_specs = [row3(1, embed + two_h)]
    if not order_is_zero:
        args.append(prev_state.astype(f32)[:, None, :])      # [b, 1, h]
        in_specs.append(row3(1, h))
    args += [
        enc, encpack["encT"], encpack["encidx_col"], encpack["enc_mask"],
        encpack["is_dup"], encpack["last_occ"], encpack["same"], idx_norm,
        prepped["wih_T"], prepped["bih"], prepped["whh_T"], prepped["bhh"],
        prepped["wo_T"], prepped["wo_b"], prepped["oov"],
        prepped["wc"], prepped["wc_b_col"],
    ]
    in_specs += [
        row3(seq, two_h), row3(two_h, seq), row3(seq, 1), row3(1, seq),
        row3(1, seq), row3(1, seq), row3(seq, seq), row3(1, seq),
        const2(embed + two_h, 3 * h), const2(1, 3 * h),
        const2(h, 3 * h), const2(1, 3 * h),
        # Wo tile: per-tile in pass 0, pinned to tile 0 in pass 1 (score_g
        # tiles are replayed from VMEM scratch -> Wo is DMA'd only once).
        pl.BlockSpec((h, tile_v), lambda bi, i, j: (0, j * (1 - i))),
        pl.BlockSpec((1, tile_v), lambda bi, i, j: (0, j * (1 - i))),
        pl.BlockSpec((1, tile_v), lambda bi, i, j: (0, j * i)),
        const2(h, two_h), const2(h, 1),
    ]
    if order_is_zero:
        args += [prepped["ws_T"], prepped["ws_b"]]
        in_specs += [const2(two_h, h), const2(1, h)]

    out_shape = (
        jax.ShapeDtypeStruct((b, 1, padded_v), f32),   # padded probabilities
        jax.ShapeDtypeStruct((b, 1, sw_pad), f32),     # [state | weighted | 0]
    )
    out_specs = (
        pl.BlockSpec((1, 1, tile_v), lambda bi, i, j: (bi, 0, j * i)),
        pl.BlockSpec((1, 1, sw_pad), lambda bi, i, j: (bi, 0, 0)),
    )
    scratch_shapes = [
        pltpu.VMEM((1, h), f32),            # GRU state
        pltpu.VMEM((1, seq), f32),          # masked copy scores
        pltpu.VMEM((1, 1), f32),            # running max
        pltpu.VMEM((1, 1), f32),            # running sum(exp)
        pltpu.VMEM((1, seq), f32),          # attn * last_occ
        pltpu.VMEM((nvt, 1, tile_v), f32),  # raw score_g tiles (+bias)
    ]

    kernel = _make_kernel(order_is_zero, seq=seq, hidden=h, tile_v=tile_v,
                          sw_pad=sw_pad, mxu_dtype=mxu_dtype)

    out_pad, sw = pl.pallas_call(
        kernel,
        out_shape=out_shape,
        grid=(b, 2, nvt),
        in_specs=in_specs,
        out_specs=out_specs,
        scratch_shapes=scratch_shapes,
        compiler_params=pltpu.CompilerParams(
            dimension_semantics=("parallel", "arbitrary", "arbitrary"),
            vmem_limit_bytes=32 * 1024 * 1024),
    )(*args)

    out = out_pad[:, :, :v_ext]                       # [b, 1, vocab+max_oovs]
    state = sw[:, 0, :h]                              # [b, h]
    weighted_out = sw[:, :, h:3 * h]                  # [b, 1, 2h]
    return out, state, weighted_out


# --------------------------------------------------------------------------- #
if __name__ == "__main__":
    key = jax.random.PRNGKey(0)
    vocab_size, embed_size, hidden_size, max_oovs = 32, 16, 32, 12
    b, seq = 2, 8

    kp, k1, k2, k3 = jax.random.split(key, 4)
    params = init_params(kp, vocab_size, embed_size, hidden_size)
    input_idx = jax.random.randint(k1, (b,), 1, vocab_size, dtype=jnp.int32)
    encoded = jax.random.normal(k2, (b, seq, 2 * hidden_size), jnp.float32)
    encoded_idx = jax.random.randint(k3, (b, seq), 0, vocab_size + max_oovs,
                                     dtype=jnp.int32)

    # one-time (per model / per source sequence) preparation
    prepped = prepare_params(params, vocab_size=vocab_size,
                             embed_size=embed_size, hidden_size=hidden_size,
                             max_oovs=max_oovs)
    encpack = precompute_encoder(encoded, encoded_idx,
                                 extended_vocab_size=vocab_size + max_oovs)

    # order == 0 : prev_state / weighted produced inside the kernel (Ws path)
    out0, state0, weighted0 = copy_decoder_forward(
        prepped, encpack, input_idx, None, None, 0)

    # order == 1 : recurrent step with fed-back state / weighted context
    out1, state1, weighted1 = copy_decoder_forward(
        prepped, encpack, input_idx, state0, weighted0, 1)

    for t in (out0, state0, weighted0, out1, state1, weighted1):
        jax.block_until_ready(t)

    assert out0.shape == (b, 1, vocab_size + max_oovs)
    assert state0.shape == (b, hidden_size)
    assert weighted0.shape == (b, 1, 2 * hidden_size)
    assert out1.shape == (b, 1, vocab_size + max_oovs)
    assert bool(jnp.all(jnp.isfinite(out0)))
    assert bool(jnp.all(jnp.isfinite(out1)))
    print("KERNEL_OK")
</pallas_src>

<mosaic_0001>
module attributes {stable_mosaic.version = 11 : i64} {
  func.func @kernel(%arg0: i32, %arg1: i32, %arg2: i32, %arg3: memref<1x1x80xf32, #tpu.memory_space<vmem>>, %arg4: memref<1x8x64xf32, #tpu.memory_space<vmem>>, %arg5: memref<1x64x8xf32, #tpu.memory_space<vmem>>, %arg6: memref<1x8x1xi32, #tpu.memory_space<vmem>>, %arg7: memref<1x1x8xf32, #tpu.memory_space<vmem>>, %arg8: memref<1x1x8xf32, #tpu.memory_space<vmem>>, %arg9: memref<1x1x8xf32, #tpu.memory_space<vmem>>, %arg10: memref<1x8x8xf32, #tpu.memory_space<vmem>>, %arg11: memref<1x1x8xf32, #tpu.memory_space<vmem>>, %arg12: memref<80x96xf32, #tpu.memory_space<vmem>>, %arg13: memref<1x96xf32, #tpu.memory_space<vmem>>, %arg14: memref<32x96xf32, #tpu.memory_space<vmem>>, %arg15: memref<1x96xf32, #tpu.memory_space<vmem>>, %arg16: memref<32x128xf32, #tpu.memory_space<vmem>>, %arg17: memref<1x128xf32, #tpu.memory_space<vmem>>, %arg18: memref<1x128xf32, #tpu.memory_space<vmem>>, %arg19: memref<32x64xf32, #tpu.memory_space<vmem>>, %arg20: memref<32x1xf32, #tpu.memory_space<vmem>>, %arg21: memref<64x32xf32, #tpu.memory_space<vmem>>, %arg22: memref<1x32xf32, #tpu.memory_space<vmem>>, %arg23: memref<1x1x128xf32, #tpu.memory_space<vmem>>, %arg24: memref<1x1x128xf32, #tpu.memory_space<vmem>>, %arg25: memref<1x32xf32, #tpu.memory_space<vmem>>, %arg26: memref<1x8xf32, #tpu.memory_space<vmem>>, %arg27: memref<1x1xf32, #tpu.memory_space<vmem>>, %arg28: memref<1x1xf32, #tpu.memory_space<vmem>>, %arg29: memref<1x8xf32, #tpu.memory_space<vmem>>, %arg30: memref<1x1x128xf32, #tpu.memory_space<vmem>>) attributes {dimension_semantics = [#tpu.dimension_semantics<parallel>, #tpu.dimension_semantics<arbitrary>, #tpu.dimension_semantics<arbitrary>], iteration_bounds = array<i64: 2, 2, 1>, scalar_prefetch = 0 : i64, scratch_operands = 6 : i64, tpu.core_type = #tpu.core_type<tc>, window_params = [{transform_indices = @transform_0, window_bounds = array<i64: 1, 1, 80>}, {transform_indices = @transform_1, window_bounds = array<i64: 1, 8, 64>}, {transform_indices = @transform_2, window_bounds = array<i64: 1, 64, 8>}, {transform_indices = @transform_3, window_bounds = array<i64: 1, 8, 1>}, {transform_indices = @transform_4, window_bounds = array<i64: 1, 1, 8>}, {transform_indices = @transform_5, window_bounds = array<i64: 1, 1, 8>}, {transform_indices = @transform_6, window_bounds = array<i64: 1, 1, 8>}, {transform_indices = @transform_7, window_bounds = array<i64: 1, 8, 8>}, {transform_indices = @transform_8, window_bounds = array<i64: 1, 1, 8>}, {pipeline_mode = #tpu.pipeline_mode<synchronous>, transform_indices = @transform_9, window_bounds = array<i64: 80, 96>}, {pipeline_mode = #tpu.pipeline_mode<synchronous>, transform_indices = @transform_10, window_bounds = array<i64: 1, 96>}, {pipeline_mode = #tpu.pipeline_mode<synchronous>, transform_indices = @transform_11, window_bounds = array<i64: 32, 96>}, {pipeline_mode = #tpu.pipeline_mode<synchronous>, transform_indices = @transform_12, window_bounds = array<i64: 1, 96>}, {transform_indices = @transform_13, window_bounds = array<i64: 32, 128>}, {transform_indices = @transform_14, window_bounds = array<i64: 1, 128>}, {transform_indices = @transform_15, window_bounds = array<i64: 1, 128>}, {pipeline_mode = #tpu.pipeline_mode<synchronous>, transform_indices = @transform_16, window_bounds = array<i64: 32, 64>}, {pipeline_mode = #tpu.pipeline_mode<synchronous>, transform_indices = @transform_17, window_bounds = array<i64: 32, 1>}, {pipeline_mode = #tpu.pipeline_mode<synchronous>, transform_indices = @transform_18, window_bounds = array<i64: 64, 32>}, {pipeline_mode = #tpu.pipeline_mode<synchronous>, transform_indices = @transform_19, window_bounds = array<i64: 1, 32>}, {transform_indices = @transform_20, window_bounds = array<i64: 1, 1, 128>}, {transform_indices = @transform_21, window_bounds = array<i64: 1, 1, 128>}]} {
    %c0_i32 = arith.constant 0 : i32
    %0 = arith.cmpi eq, %arg1, %c0_i32 : i32
    %c0_i32_0 = arith.constant 0 : i32
    %1 = arith.cmpi eq, %arg2, %c0_i32_0 : i32
    %2 = arith.andi %0, %1 : i1
    %3 = arith.extui %2 : i1 to i32
    %c0_i32_1 = arith.constant 0 : i32
    %4 = arith.cmpi ne, %3, %c0_i32_1 : i32
    scf.if %4 {
      %c0 = arith.constant 0 : index
      %c0_8 = arith.constant 0 : index
      %c0_9 = arith.constant 0 : index
      %16 = vector.load %arg3[%c0, %c0_8, %c0_9] : memref<1x1x80xf32, #tpu.memory_space<vmem>>, vector<1x1x80xf32>
      %17 = vector.shape_cast %16 : vector<1x1x80xf32> to vector<1x80xf32>
      %c0_10 = arith.constant 0 : index
      %c0_11 = arith.constant 0 : index
      %c0_12 = arith.constant 0 : index
      %18 = vector.load %arg4[%c0_10, %c0_11, %c0_12] : memref<1x8x64xf32, #tpu.memory_space<vmem>>, vector<1x8x64xf32>
      %19 = vector.shape_cast %18 : vector<1x8x64xf32> to vector<8x64xf32>
      %20 = vector.extract_strided_slice %19 {offsets = [7, 0], sizes = [1, 64], strides = [1, 1]} : vector<8x64xf32> to vector<1x64xf32>
      %c0_13 = arith.constant 0 : index
      %c0_14 = arith.constant 0 : index
      %21 = vector.load %arg21[%c0_13, %c0_14] : memref<64x32xf32, #tpu.memory_space<vmem>>, vector<64x32xf32>
      %cst = arith.constant dense<0.000000e+00> : vector<1x32xf32>
      %22 = tpu.matmul %20, %21, %cst {dimension_numbers = #tpu.dot_dimension_numbers<[1], [0], [0], [1], [0, 0, 1, 1], [], []>} : vector<1x64xf32>, vector<64x32xf32>, vector<1x32xf32> -> vector<1x32xf32>
      %c0_15 = arith.constant 0 : index
      %c0_16 = arith.constant 0 : index
      %23 = vector.load %arg22[%c0_15, %c0_16] : memref<1x32xf32, #tpu.memory_space<vmem>>, vector<1x32xf32>
      %24 = arith.addf %22, %23 : vector<1x32xf32>
      %c0_17 = arith.constant 0 : index
      %c0_18 = arith.constant 0 : index
      %25 = vector.load %arg12[%c0_17, %c0_18] : memref<80x96xf32, #tpu.memory_space<vmem>>, vector<80x96xf32>
      %cst_19 = arith.constant dense<0.000000e+00> : vector<1x96xf32>
      %26 = tpu.matmul %17, %25, %cst_19 {dimension_numbers = #tpu.dot_dimension_numbers<[1], [0], [0], [1], [0, 0, 1, 1], [], []>} : vector<1x80xf32>, vector<80x96xf32>, vector<1x96xf32> -> vector<1x96xf32>
      %c0_20 = arith.constant 0 : index
      %c0_21 = arith.constant 0 : index
      %27 = vector.load %arg13[%c0_20, %c0_21] : memref<1x96xf32, #tpu.memory_space<vmem>>, vector<1x96xf32>
      %28 = arith.addf %26, %27 : vector<1x96xf32>
      %c0_22 = arith.constant 0 : index
      %c0_23 = arith.constant 0 : index
      %29 = vector.load %arg14[%c0_22, %c0_23] : memref<32x96xf32, #tpu.memory_space<vmem>>, vector<32x96xf32>
      %cst_24 = arith.constant dense<0.000000e+00> : vector<1x96xf32>
      %30 = tpu.matmul %24, %29, %cst_24 {dimension_numbers = #tpu.dot_dimension_numbers<[1], [0], [0], [1], [0, 0, 1, 1], [], []>} : vector<1x32xf32>, vector<32x96xf32>, vector<1x96xf32> -> vector<1x96xf32>
      %c0_25 = arith.constant 0 : index
      %c0_26 = arith.constant 0 : index
      %31 = vector.load %arg15[%c0_25, %c0_26] : memref<1x96xf32, #tpu.memory_space<vmem>>, vector<1x96xf32>
      %32 = arith.addf %30, %31 : vector<1x96xf32>
      %33 = vector.extract_strided_slice %28 {offsets = [0, 0], sizes = [1, 32], strides = [1, 1]} : vector<1x96xf32> to vector<1x32xf32>
      %34 = vector.extract_strided_slice %32 {offsets = [0, 0], sizes = [1, 32], strides = [1, 1]} : vector<1x96xf32> to vector<1x32xf32>
      %35 = arith.addf %33, %34 : vector<1x32xf32>
      %36 = arith.negf %35 : vector<1x32xf32>
      %37 = math.exp %36 : vector<1x32xf32>
      %cst_27 = arith.constant 1.000000e+00 : f32
      %38 = vector.broadcast %cst_27 : f32 to vector<1x32xf32>
      %39 = arith.addf %38, %37 : vector<1x32xf32>
      %40 = arith.divf %38, %39 : vector<1x32xf32>
      %41 = vector.extract_strided_slice %28 {offsets = [0, 32], sizes = [1, 32], strides = [1, 1]} : vector<1x96xf32> to vector<1x32xf32>
      %42 = vector.extract_strided_slice %32 {offsets = [0, 32], sizes = [1, 32], strides = [1, 1]} : vector<1x96xf32> to vector<1x32xf32>
      %43 = arith.addf %41, %42 : vector<1x32xf32>
      %44 = arith.negf %43 : vector<1x32xf32>
      %45 = math.exp %44 : vector<1x32xf32>
      %cst_28 = arith.constant 1.000000e+00 : f32
      %46 = vector.broadcast %cst_28 : f32 to vector<1x32xf32>
      %47 = arith.addf %46, %45 : vector<1x32xf32>
      %48 = arith.divf %46, %47 : vector<1x32xf32>
      %49 = vector.extract_strided_slice %28 {offsets = [0, 64], sizes = [1, 32], strides = [1, 1]} : vector<1x96xf32> to vector<1x32xf32>
      %50 = vector.extract_strided_slice %32 {offsets = [0, 64], sizes = [1, 32], strides = [1, 1]} : vector<1x96xf32> to vector<1x32xf32>
      %51 = arith.mulf %40, %50 : vector<1x32xf32>
      %52 = arith.addf %49, %51 : vector<1x32xf32>
      %53 = math.tanh %52 : vector<1x32xf32>
      %cst_29 = arith.constant 1.000000e+00 : f32
      %54 = vector.broadcast %cst_29 : f32 to vector<1x32xf32>
      %55 = arith.subf %54, %48 : vector<1x32xf32>
      %56 = arith.mulf %55, %53 : vector<1x32xf32>
      %57 = arith.mulf %48, %24 : vector<1x32xf32>
      %58 = arith.addf %56, %57 : vector<1x32xf32>
      %c0_30 = arith.constant 0 : index
      %c0_31 = arith.constant 0 : index
      %59 = vector.load %arg25[%c0_30, %c0_31] : memref<1x32xf32, #tpu.memory_space<vmem>>, vector<1x32xf32>
      tpu.vector_store %arg25[%c0_30, %c0_31], %58 {strides = array<i32>} : memref<1x32xf32, #tpu.memory_space<vmem>>, vector<1x32xf32>,
      %c0_32 = arith.constant 0 : index
      %c0_33 = arith.constant 0 : index
      %60 = vector.load %arg19[%c0_32, %c0_33] : memref<32x64xf32, #tpu.memory_space<vmem>>, vector<32x64xf32>
      %c0_34 = arith.constant 0 : index
      %c0_35 = arith.constant 0 : index
      %c0_36 = arith.constant 0 : index
      %61 = vector.load %arg5[%c0_34, %c0_35, %c0_36] : memref<1x64x8xf32, #tpu.memory_space<vmem>>, vector<1x64x8xf32>
      %62 = vector.shape_cast %61 : vector<1x64x8xf32> to vector<64x8xf32>
      %cst_37 = arith.constant dense<0.000000e+00> : vector<32x8xf32>
      %63 = tpu.matmul %60, %62, %cst_37 {dimension_numbers = #tpu.dot_dimension_numbers<[1], [0], [0], [1], [0, 0, 1, 1], [], []>} : vector<32x64xf32>, vector<64x8xf32>, vector<32x8xf32> -> vector<32x8xf32>
      %c0_38 = arith.constant 0 : index
      %c0_39 = arith.constant 0 : index
      %64 = vector.load %arg20[%c0_38, %c0_39] : memref<32x1xf32, #tpu.memory_space<vmem>>, vector<32x1xf32>
      %65 = vector.broadcast %64 : vector<32x1xf32> to vector<32x8xf32>
      %66 = arith.addf %63, %65 : vector<32x8xf32>
      %67 = math.tanh %66 : vector<32x8xf32>
      %cst_40 = arith.constant dense<0.000000e+00> : vector<1x8xf32>
      %68 = tpu.matmul %58, %67, %cst_40 {dimension_numbers = #tpu.dot_dimension_numbers<[1], [0], [0], [1], [0, 0, 1, 1], [], []>} : vector<1x32xf32>, vector<32x8xf32>, vector<1x8xf32> -> vector<1x8xf32>
      %69 = math.tanh %68 : vector<1x8xf32>
      %c0_41 = arith.constant 0 : index
      %c0_42 = arith.constant 0 : index
      %c0_43 = arith.constant 0 : index
      %70 = vector.load %arg7[%c0_41, %c0_42, %c0_43] : memref<1x1x8xf32, #tpu.memory_space<vmem>>, vector<1x1x8xf32>
      %71 = vector.shape_cast %70 : vector<1x1x8xf32> to vector<1x8xf32>
      %72 = arith.addf %69, %71 : vector<1x8xf32>
      %c0_44 = arith.constant 0 : index
      %c0_45 = arith.constant 0 : index
      %73 = vector.load %arg26[%c0_44, %c0_45] : memref<1x8xf32, #tpu.memory_space<vmem>>, vector<1x8xf32>
      tpu.vector_store %arg26[%c0_44, %c0_45], %72 {strides = array<i32>} : memref<1x8xf32, #tpu.memory_space<vmem>>, vector<1x8xf32>,
      %cst_46 = arith.constant dense<0xFF800000> : vector<1xf32>
      %74 = vector.multi_reduction <maximumf>, %72, %cst_46 [1] : vector<1x8xf32> to vector<1xf32>
      %75 = vector.shape_cast %74 : vector<1xf32> to vector<1x1xf32>
      %c0_47 = arith.constant 0 : index
      %c0_48 = arith.constant 0 : index
      %76 = vector.load %arg27[%c0_47, %c0_48] : memref<1x1xf32, #tpu.memory_space<vmem>>, vector<1x1xf32>
      tpu.vector_store %arg27[%c0_47, %c0_48], %75 {strides = array<i32>} : memref<1x1xf32, #tpu.memory_space<vmem>>, vector<1x1xf32>,
      %77 = vector.broadcast %75 : vector<1x1xf32> to vector<1x8xf32>
      %78 = arith.subf %72, %77 : vector<1x8xf32>
      %79 = math.exp %78 : vector<1x8xf32>
      %cst_49 = arith.constant dense<0.000000e+00> : vector<1xf32>
      %80 = vector.multi_reduction <add>, %79, %cst_49 [1] : vector<1x8xf32> to vector<1xf32>
      %81 = vector.shape_cast %80 : vector<1xf32> to vector<1x1xf32>
      %c0_50 = arith.constant 0 : index
      %c0_51 = arith.constant 0 : index
      %82 = vector.load %arg28[%c0_50, %c0_51] : memref<1x1xf32, #tpu.memory_space<vmem>>, vector<1x1xf32>
      tpu.vector_store %arg28[%c0_50, %c0_51], %81 {strides = array<i32>} : memref<1x1xf32, #tpu.memory_space<vmem>>, vector<1x1xf32>,
    } else {
    }
    %c0_i32_2 = arith.constant 0 : i32
    %5 = arith.cmpi eq, %arg1, %c0_i32_2 : i32
    %6 = arith.extui %5 : i1 to i32
    %c0_i32_3 = arith.constant 0 : i32
    %7 = arith.cmpi ne, %6, %c0_i32_3 : i32
    scf.if %7 {
      %c0 = arith.constant 0 : index
      %c0_8 = arith.constant 0 : index
      %16 = vector.load %arg25[%c0, %c0_8] : memref<1x32xf32, #tpu.memory_space<vmem>>, vector<1x32xf32>
      %c0_9 = arith.constant 0 : index
      %c0_10 = arith.constant 0 : index
      %17 = vector.load %arg16[%c0_9, %c0_10] : memref<32x128xf32, #tpu.memory_space<vmem>>, vector<32x128xf32>
      %cst = arith.constant dense<0.000000e+00> : vector<1x128xf32>
      %18 = tpu.matmul %16, %17, %cst {dimension_numbers = #tpu.dot_dimension_numbers<[1], [0], [0], [1], [0, 0, 1, 1], [], []>} : vector<1x32xf32>, vector<32x128xf32>, vector<1x128xf32> -> vector<1x128xf32>
      %c0_11 = arith.constant 0 : index
      %c0_12 = arith.constant 0 : index
      %19 = vector.load %arg17[%c0_11, %c0_12] : memref<1x128xf32, #tpu.memory_space<vmem>>, vector<1x128xf32>
      %20 = arith.addf %18, %19 : vector<1x128xf32>
      %21 = arith.index_cast %arg2 : i32 to index
      %c0_13 = arith.constant 0 : index
      %c0_14 = arith.constant 0 : index
      %22 = vector.load %arg30[%21, %c0_13, %c0_14] : memref<1x1x128xf32, #tpu.memory_space<vmem>>, vector<1x1x128xf32>
      %23 = vector.shape_cast %22 : vector<1x1x128xf32> to vector<1x128xf32>
      %24 = vector.shape_cast %20 : vector<1x128xf32> to vector<1x1x128xf32>
      tpu.vector_store %arg30[%21, %c0_13, %c0_14], %24 {strides = array<i32>} : memref<1x1x128xf32, #tpu.memory_space<vmem>>, vector<1x1x128xf32>,
      %c0_15 = arith.constant 0 : index
      %c0_16 = arith.constant 0 : index
      %25 = vector.load %arg27[%c0_15, %c0_16] : memref<1x1xf32, #tpu.memory_space<vmem>>, vector<1x1xf32>
      %cst_17 = arith.constant dense<0xFF800000> : vector<1xf32>
      %26 = vector.multi_reduction <maximumf>, %20, %cst_17 [1] : vector<1x128xf32> to vector<1xf32>
      %27 = vector.shape_cast %26 : vector<1xf32> to vector<1x1xf32>
      %28 = arith.maximumf %25, %27 : vector<1x1xf32>
      %c0_18 = arith.constant 0 : index
      %c0_19 = arith.constant 0 : index
      %29 = vector.load %arg28[%c0_18, %c0_19] : memref<1x1xf32, #tpu.memory_space<vmem>>, vector<1x1xf32>
      %30 = arith.subf %25, %28 : vector<1x1xf32>
      %31 = math.exp %30 : vector<1x1xf32>
      %32 = arith.mulf %29, %31 : vector<1x1xf32>
      %33 = vector.broadcast %28 : vector<1x1xf32> to vector<1x128xf32>
      %34 = arith.subf %20, %33 : vector<1x128xf32>
      %35 = math.exp %34 : vector<1x128xf32>
      %cst_20 = arith.constant dense<0.000000e+00> : vector<1xf32>
      %36 = vector.multi_reduction <add>, %35, %cst_20 [1] : vector<1x128xf32> to vector<1xf32>
      %37 = vector.shape_cast %36 : vector<1xf32> to vector<1x1xf32>
      %38 = arith.addf %32, %37 : vector<1x1xf32>
      %c0_21 = arith.constant 0 : index
      %c0_22 = arith.constant 0 : index
      %39 = vector.load %arg28[%c0_21, %c0_22] : memref<1x1xf32, #tpu.memory_space<vmem>>, vector<1x1xf32>
      tpu.vector_store %arg28[%c0_21, %c0_22], %38 {strides = array<i32>} : memref<1x1xf32, #tpu.memory_space<vmem>>, vector<1x1xf32>,
      %c0_23 = arith.constant 0 : index
      %c0_24 = arith.constant 0 : index
      %40 = vector.load %arg27[%c0_23, %c0_24] : memref<1x1xf32, #tpu.memory_space<vmem>>, vector<1x1xf32>
      tpu.vector_store %arg27[%c0_23, %c0_24], %28 {strides = array<i32>} : memref<1x1xf32, #tpu.memory_space<vmem>>, vector<1x1xf32>,
    } else {
    }
    %c1_i32 = arith.constant 1 : i32
    %8 = arith.cmpi eq, %arg1, %c1_i32 : i32
    %c0_i32_4 = arith.constant 0 : i32
    %9 = arith.cmpi eq, %arg2, %c0_i32_4 : i32
    %10 = arith.andi %8, %9 : i1
    %11 = arith.extui %10 : i1 to i32
    %c0_i32_5 = arith.constant 0 : i32
    %12 = arith.cmpi ne, %11, %c0_i32_5 : i32
    scf.if %12 {
      %c0 = arith.constant 0 : index
      %c0_8 = arith.constant 0 : index
      %16 = vector.load %arg28[%c0, %c0_8] : memref<1x1xf32, #tpu.memory_space<vmem>>, vector<1x1xf32>
      %17 = tpu.reciprocal %16 {approx = true} : vector<1x1xf32> -> vector<1x1xf32>
      %c0_9 = arith.constant 0 : index
      %c0_10 = arith.constant 0 : index
      %18 = vector.load %arg26[%c0_9, %c0_10] : memref<1x8xf32, #tpu.memory_space<vmem>>, vector<1x8xf32>
      %c0_11 = arith.constant 0 : index
      %c0_12 = arith.constant 0 : index
      %19 = vector.load %arg27[%c0_11, %c0_12] : memref<1x1xf32, #tpu.memory_space<vmem>>, vector<1x1xf32>
      %20 = vector.broadcast %19 : vector<1x1xf32> to vector<1x8xf32>
      %21 = arith.subf %18, %20 : vector<1x8xf32>
      %22 = math.exp %21 : vector<1x8xf32>
      %23 = vector.broadcast %17 : vector<1x1xf32> to vector<1x8xf32>
      %24 = arith.mulf %22, %23 : vector<1x8xf32>
      %c0_13 = arith.constant 0 : index
      %c0_14 = arith.constant 0 : index
      %c0_15 = arith.constant 0 : index
      %25 = vector.load %arg10[%c0_13, %c0_14, %c0_15] : memref<1x8x8xf32, #tpu.memory_space<vmem>>, vector<1x8x8xf32>
      %26 = vector.shape_cast %25 : vector<1x8x8xf32> to vector<8x8xf32>
      %cst = arith.constant dense<0.000000e+00> : vector<1x8xf32>
      %27 = tpu.matmul %24, %26, %cst {dimension_numbers = #tpu.dot_dimension_numbers<[1], [0], [0], [1], [0, 0, 1, 1], [], []>} : vector<1x8xf32>, vector<8x8xf32>, vector<1x8xf32> -> vector<1x8xf32>
      %c0_16 = arith.constant 0 : index
      %c0_17 = arith.constant 0 : index
      %c0_18 = arith.constant 0 : index
      %28 = vector.load %arg8[%c0_16, %c0_17, %c0_18] : memref<1x1x8xf32, #tpu.memory_space<vmem>>, vector<1x1x8xf32>
      %29 = vector.shape_cast %28 : vector<1x1x8xf32> to vector<1x8xf32>
      %cst_19 = arith.constant 1.000000e+00 : f32
      %30 = vector.broadcast %cst_19 : f32 to vector<1x8xf32>
      %31 = arith.subf %30, %29 : vector<1x8xf32>
      %32 = arith.mulf %24, %31 : vector<1x8xf32>
      %33 = arith.mulf %29, %24 : vector<1x8xf32>
      %34 = arith.mulf %33, %27 : vector<1x8xf32>
      %35 = arith.addf %32, %34 : vector<1x8xf32>
      %c0_20 = arith.constant 0 : index
      %c0_21 = arith.constant 0 : index
      %c0_22 = arith.constant 0 : index
      %36 = vector.load %arg9[%c0_20, %c0_21, %c0_22] : memref<1x1x8xf32, #tpu.memory_space<vmem>>, vector<1x1x8xf32>
      %37 = vector.shape_cast %36 : vector<1x1x8xf32> to vector<1x8xf32>
      %38 = arith.mulf %35, %37 : vector<1x8xf32>
      %c0_23 = arith.constant 0 : index
      %c0_24 = arith.constant 0 : index
      %39 = vector.load %arg29[%c0_23, %c0_24] : memref<1x8xf32, #tpu.memory_space<vmem>>, vector<1x8xf32>
      tpu.vector_store %arg29[%c0_23, %c0_24], %38 {strides = array<i32>} : memref<1x8xf32, #tpu.memory_space<vmem>>, vector<1x8xf32>,
      %c0_25 = arith.constant 0 : index
      %c0_26 = arith.constant 0 : index
      %c0_27 = arith.constant 0 : index
      %40 = vector.load %arg11[%c0_25, %c0_26, %c0_27] : memref<1x1x8xf32, #tpu.memory_space<vmem>>, vector<1x1x8xf32>
      %41 = vector.shape_cast %40 : vector<1x1x8xf32> to vector<1x8xf32>
      %42 = arith.mulf %24, %41 : vector<1x8xf32>
      %c0_28 = arith.constant 0 : index
      %c0_29 = arith.constant 0 : index
      %c0_30 = arith.constant 0 : index
      %43 = vector.load %arg4[%c0_28, %c0_29, %c0_30] : memref<1x8x64xf32, #tpu.memory_space<vmem>>, vector<1x8x64xf32>
      %44 = vector.shape_cast %43 : vector<1x8x64xf32> to vector<8x64xf32>
      %cst_31 = arith.constant dense<0.000000e+00> : vector<1x64xf32>
      %45 = tpu.matmul %42, %44, %cst_31 {dimension_numbers = #tpu.dot_dimension_numbers<[1], [0], [0], [1], [0, 0, 1, 1], [], []>} : vector<1x8xf32>, vector<8x64xf32>, vector<1x64xf32> -> vector<1x64xf32>
      %c0_32 = arith.constant 0 : index
      %c0_33 = arith.constant 0 : index
      %46 = vector.load %arg25[%c0_32, %c0_33] : memref<1x32xf32, #tpu.memory_space<vmem>>, vector<1x32xf32>
      %cst_34 = arith.constant 0.000000e+00 : f32
      %47 = vector.broadcast %cst_34 : f32 to vector<1x32xf32>
      %48 = tpu.concatenate %46, %45, %47 in 1 : vector<1x32xf32>, vector<1x64xf32>, vector<1x32xf32> -> vector<1x128xf32>
      %49 = vector.shape_cast %48 : vector<1x128xf32> to vector<1x1x128xf32>
      %c0_35 = arith.constant 0 : index
      %c0_36 = arith.constant 0 : index
      %c0_37 = arith.constant 0 : index
      %50 = vector.load %arg24[%c0_35, %c0_36, %c0_37] : memref<1x1x128xf32, #tpu.memory_space<vmem>>, vector<1x1x128xf32>
      tpu.vector_store %arg24[%c0_35, %c0_36, %c0_37], %49 {strides = array<i32>} : memref<1x1x128xf32, #tpu.memory_space<vmem>>, vector<1x1x128xf32>,
    } else {
    }
    %c1_i32_6 = arith.constant 1 : i32
    %13 = arith.cmpi eq, %arg1, %c1_i32_6 : i32
    %14 = arith.extui %13 : i1 to i32
    %c0_i32_7 = arith.constant 0 : i32
    %15 = arith.cmpi ne, %14, %c0_i32_7 : i32
    scf.if %15 {
      %c0 = arith.constant 0 : index
      %c0_8 = arith.constant 0 : index
      %16 = vector.load %arg28[%c0, %c0_8] : memref<1x1xf32, #tpu.memory_space<vmem>>, vector<1x1xf32>
      %17 = tpu.reciprocal %16 {approx = true} : vector<1x1xf32> -> vector<1x1xf32>
      %18 = arith.index_cast %arg2 : i32 to index
      %c0_9 = arith.constant 0 : index
      %c0_10 = arith.constant 0 : index
      %19 = vector.load %arg30[%18, %c0_9, %c0_10] : memref<1x1x128xf32, #tpu.memory_space<vmem>>, vector<1x1x128xf32>
      %20 = vector.shape_cast %19 : vector<1x1x128xf32> to vector<1x128xf32>
      %c0_11 = arith.constant 0 : index
      %c0_12 = arith.constant 0 : index
      %21 = vector.load %arg27[%c0_11, %c0_12] : memref<1x1xf32, #tpu.memory_space<vmem>>, vector<1x1xf32>
      %22 = vector.broadcast %21 : vector<1x1xf32> to vector<1x128xf32>
      %23 = arith.subf %20, %22 : vector<1x128xf32>
      %24 = math.exp %23 : vector<1x128xf32>
      %25 = vector.broadcast %17 : vector<1x1xf32> to vector<1x128xf32>
      %26 = arith.mulf %24, %25 : vector<1x128xf32>
      %c128_i32 = arith.constant 128 : i32
      %27 = arith.muli %arg2, %c128_i32 : i32
      %28 = tpu.iota {dimensions = array<i32: 1>} : vector<1x128xi32>
      %29 = vector.broadcast %27 : i32 to vector<1x128xi32>
      %30 = arith.addi %29, %28 : vector<1x128xi32>
      %c0_13 = arith.constant 0 : index
      %c0_14 = arith.constant 0 : index
      %c0_15 = arith.constant 0 : index
      %31 = vector.load %arg6[%c0_13, %c0_14, %c0_15] : memref<1x8x1xi32, #tpu.memory_space<vmem>>, vector<1x8x1xi32>
      %32 = vector.shape_cast %31 : vector<1x8x1xi32> to vector<8x1xi32>
      %33 = vector.broadcast %32 : vector<8x1xi32> to vector<8x128xi32>
      %34 = vector.broadcast %30 : vector<1x128xi32> to vector<8x128xi32>
      %35 = arith.cmpi eq, %33, %34 : vector<8x128xi32>
      %36 = arith.extui %35 : vector<8x128xi1> to vector<8x128xi32>
      %37 = arith.sitofp %36 : vector<8x128xi32> to vector<8x128xf32>
      %c0_16 = arith.constant 0 : index
      %c0_17 = arith.constant 0 : index
      %38 = vector.load %arg29[%c0_16, %c0_17] : memref<1x8xf32, #tpu.memory_space<vmem>>, vector<1x8xf32>
      %cst = arith.constant dense<0.000000e+00> : vector<1x128xf32>
      %39 = tpu.matmul %38, %37, %cst {dimension_numbers = #tpu.dot_dimension_numbers<[1], [0], [0], [1], [0, 0, 1, 1], [], []>} : vector<1x8xf32>, vector<8x128xf32>, vector<1x128xf32> -> vector<1x128xf32>
      %c0_18 = arith.constant 0 : index
      %c0_19 = arith.constant 0 : index
      %40 = vector.load %arg18[%c0_18, %c0_19] : memref<1x128xf32, #tpu.memory_space<vmem>>, vector<1x128xf32>
      %41 = arith.addf %26, %40 : vector<1x128xf32>
      %42 = arith.addf %41, %39 : vector<1x128xf32>
      %43 = vector.shape_cast %42 : vector<1x128xf32> to vector<1x1x128xf32>
      %c0_20 = arith.constant 0 : index
      %c0_21 = arith.constant 0 : index
      %c0_22 = arith.constant 0 : index
      %44 = vector.load %arg23[%c0_20, %c0_21, %c0_22] : memref<1x1x128xf32, #tpu.memory_space<vmem>>, vector<1x1x128xf32>
      tpu.vector_store %arg23[%c0_20, %c0_21, %c0_22], %43 {strides = array<i32>} : memref<1x1x128xf32, #tpu.memory_space<vmem>>, vector<1x1x128xf32>,
    } else {
    }
    return
  }
  func.func @transform_0(%arg0: i32, %arg1: i32, %arg2: i32) -> (i32, i32, i32) {
    %c0_i32 = arith.constant 0 : i32
    %c0_i32_0 = arith.constant 0 : i32
    %c0_i32_1 = arith.constant 0 : i32
    return %arg0, %c0_i32, %c0_i32_0 : i32, i32, i32
  }
  func.func @transform_1(%arg0: i32, %arg1: i32, %arg2: i32) -> (i32, i32, i32) {
    %c0_i32 = arith.constant 0 : i32
    %c0_i32_0 = arith.constant 0 : i32
    %c0_i32_1 = arith.constant 0 : i32
    return %arg0, %c0_i32, %c0_i32_0 : i32, i32, i32
  }
  func.func @transform_2(%arg0: i32, %arg1: i32, %arg2: i32) -> (i32, i32, i32) {
    %c0_i32 = arith.constant 0 : i32
    %c0_i32_0 = arith.constant 0 : i32
    %c0_i32_1 = arith.constant 0 : i32
    return %arg0, %c0_i32, %c0_i32_0 : i32, i32, i32
  }
  func.func @transform_3(%arg0: i32, %arg1: i32, %arg2: i32) -> (i32, i32, i32) {
    %c0_i32 = arith.constant 0 : i32
    %c0_i32_0 = arith.constant 0 : i32
    %c0_i32_1 = arith.constant 0 : i32
    return %arg0, %c0_i32, %c0_i32_0 : i32, i32, i32
  }
  func.func @transform_4(%arg0: i32, %arg1: i32, %arg2: i32) -> (i32, i32, i32) {
    %c0_i32 = arith.constant 0 : i32
    %c0_i32_0 = arith.constant 0 : i32
    %c0_i32_1 = arith.constant 0 : i32
    return %arg0, %c0_i32, %c0_i32_0 : i32, i32, i32
  }
  func.func @transform_5(%arg0: i32, %arg1: i32, %arg2: i32) -> (i32, i32, i32) {
    %c0_i32 = arith.constant 0 : i32
    %c0_i32_0 = arith.constant 0 : i32
    %c0_i32_1 = arith.constant 0 : i32
    return %arg0, %c0_i32, %c0_i32_0 : i32, i32, i32
  }
  func.func @transform_6(%arg0: i32, %arg1: i32, %arg2: i32) -> (i32, i32, i32) {
    %c0_i32 = arith.constant 0 : i32
    %c0_i32_0 = arith.constant 0 : i32
    %c0_i32_1 = arith.constant 0 : i32
    return %arg0, %c0_i32, %c0_i32_0 : i32, i32, i32
  }
  func.func @transform_7(%arg0: i32, %arg1: i32, %arg2: i32) -> (i32, i32, i32) {
    %c0_i32 = arith.constant 0 : i32
    %c0_i32_0 = arith.constant 0 : i32
    %c0_i32_1 = arith.constant 0 : i32
    return %arg0, %c0_i32, %c0_i32_0 : i32, i32, i32
  }
  func.func @transform_8(%arg0: i32, %arg1: i32, %arg2: i32) -> (i32, i32, i32) {
    %c0_i32 = arith.constant 0 : i32
    %c0_i32_0 = arith.constant 0 : i32
    %c0_i32_1 = arith.constant 0 : i32
    return %arg0, %c0_i32, %c0_i32_0 : i32, i32, i32
  }
  func.func @transform_9(%arg0: i32, %arg1: i32, %arg2: i32) -> (i32, i32) {
    %c0_i32 = arith.constant 0 : i32
    %c0_i32_0 = arith.constant 0 : i32
    %c0_i32_1 = arith.constant 0 : i32
    return %c0_i32, %c0_i32_0 : i32, i32
  }
  func.func @transform_10(%arg0: i32, %arg1: i32, %arg2: i32) -> (i32, i32) {
    %c0_i32 = arith.constant 0 : i32
    %c0_i32_0 = arith.constant 0 : i32
    %c0_i32_1 = arith.constant 0 : i32
    return %c0_i32, %c0_i32_0 : i32, i32
  }
  func.func @transform_11(%arg0: i32, %arg1: i32, %arg2: i32) -> (i32, i32) {
    %c0_i32 = arith.constant 0 : i32
    %c0_i32_0 = arith.constant 0 : i32
    %c0_i32_1 = arith.constant 0 : i32
    return %c0_i32, %c0_i32_0 : i32, i32
  }
  func.func @transform_12(%arg0: i32, %arg1: i32, %arg2: i32) -> (i32, i32) {
    %c0_i32 = arith.constant 0 : i32
    %c0_i32_0 = arith.constant 0 : i32
    %c0_i32_1 = arith.constant 0 : i32
    return %c0_i32, %c0_i32_0 : i32, i32
  }
  func.func @transform_13(%arg0: i32, %arg1: i32, %arg2: i32) -> (i32, i32) {
    %c1_i32 = arith.constant 1 : i32
    %0 = arith.subi %c1_i32, %arg1 : i32
    %1 = arith.muli %arg2, %0 : i32
    %c0_i32 = arith.constant 0 : i32
    %c0_i32_0 = arith.constant 0 : i32
    return %c0_i32, %1 : i32, i32
  }
  func.func @transform_14(%arg0: i32, %arg1: i32, %arg2: i32) -> (i32, i32) {
    %c1_i32 = arith.constant 1 : i32
    %0 = arith.subi %c1_i32, %arg1 : i32
    %1 = arith.muli %arg2, %0 : i32
    %c0_i32 = arith.constant 0 : i32
    %c0_i32_0 = arith.constant 0 : i32
    return %c0_i32, %1 : i32, i32
  }
  func.func @transform_15(%arg0: i32, %arg1: i32, %arg2: i32) -> (i32, i32) {
    %0 = arith.muli %arg2, %arg1 : i32
    %c0_i32 = arith.constant 0 : i32
    %c0_i32_0 = arith.constant 0 : i32
    return %c0_i32, %0 : i32, i32
  }
  func.func @transform_16(%arg0: i32, %arg1: i32, %arg2: i32) -> (i32, i32) {
    %c0_i32 = arith.constant 0 : i32
    %c0_i32_0 = arith.constant 0 : i32
    %c0_i32_1 = arith.constant 0 : i32
    return %c0_i32, %c0_i32_0 : i32, i32
  }
  func.func @transform_17(%arg0: i32, %arg1: i32, %arg2: i32) -> (i32, i32) {
    %c0_i32 = arith.constant 0 : i32
    %c0_i32_0 = arith.constant 0 : i32
    %c0_i32_1 = arith.constant 0 : i32
    return %c0_i32, %c0_i32_0 : i32, i32
  }
  func.func @transform_18(%arg0: i32, %arg1: i32, %arg2: i32) -> (i32, i32) {
    %c0_i32 = arith.constant 0 : i32
    %c0_i32_0 = arith.constant 0 : i32
    %c0_i32_1 = arith.constant 0 : i32
    return %c0_i32, %c0_i32_0 : i32, i32
  }
  func.func @transform_19(%arg0: i32, %arg1: i32, %arg2: i32) -> (i32, i32) {
    %c0_i32 = arith.constant 0 : i32
    %c0_i32_0 = arith.constant 0 : i32
    %c0_i32_1 = arith.constant 0 : i32
    return %c0_i32, %c0_i32_0 : i32, i32
  }
  func.func @transform_20(%arg0: i32, %arg1: i32, %arg2: i32) -> (i32, i32, i32) {
    %0 = arith.muli %arg2, %arg1 : i32
    %c0_i32 = arith.constant 0 : i32
    %c0_i32_0 = arith.constant 0 : i32
    return %arg0, %c0_i32, %0 : i32, i32, i32
  }
  func.func @transform_21(%arg0: i32, %arg1: i32, %arg2: i32) -> (i32, i32, i32) {
    %c0_i32 = arith.constant 0 : i32
    %c0_i32_0 = arith.constant 0 : i32
    %c0_i32_1 = arith.constant 0 : i32
    return %arg0, %c0_i32, %c0_i32_0 : i32, i32, i32
  }
}

</mosaic_0001>

<bundles_post_ra>
// kernel: tpu_custom_call.1
= control target key start
LH: loop header
LB: loop body
LE: loop exit
PB: predicated region body
PF: predicated region fallthrough
CT: control target
= control target key end

     0   :  { %s3156_s0 = inlined_call_operand.vmem [shape: f32[2,1,80], index: 0, kind: input, shape index: {}]   ;;  %s3157_s1 = inlined_call_operand.vmem [shape: f32[2,8,64], index: 1, kind: input, shape index: {}]   ;;  %s3158_s2 = inlined_call_operand.vmem [shape: f32[2,64,8], index: 2, kind: input, shape index: {}]   ;;  %s3159_s3 = inlined_call_operand.vmem [shape: s32[2,8,1], index: 3, kind: input, shape index: {}]   ;;  %s3160_s4 = inlined_call_operand.vmem [shape: f32[2,1,8], index: 4, kind: input, shape index: {}]   ;;  %s3161_s5 = inlined_call_operand.vmem [shape: f32[2,1,8], index: 5, kind: input, shape index: {}]   ;;  %s3162_s6 = inlined_call_operand.vmem [shape: f32[2,1,8], index: 6, kind: input, shape index: {}]   ;;  %s3163_s7 = inlined_call_operand.vmem [shape: f32[2,8,8], index: 7, kind: input, shape index: {}]   ;;  %s3164_s8 = inlined_call_operand.vmem [shape: f32[2,1,8], index: 8, kind: input, shape index: {}]   ;;  %s3165_s9 = inlined_call_operand.vmem [shape: f32[80,96], index: 9, kind: input, shape index: {}]   ;;  %s3166_s10 = inlined_call_operand.vmem [shape: f32[1,96], index: 10, kind: input, shape index: {}]   ;;  %s3167_s11 = inlined_call_operand.vmem [shape: f32[32,96], index: 11, kind: input, shape index: {}]   ;;  %s3168_s12 = inlined_call_operand.vmem [shape: f32[1,96], index: 12, kind: input, shape index: {}]   ;;  %s3169_s13 = inlined_call_operand.vmem [shape: f32[32,128], index: 13, kind: input, shape index: {}]   ;;  %s3170_s14 = inlined_call_operand.vmem [shape: f32[1,128], index: 14, kind: input, shape index: {}]   ;;  %s3171_s15 = inlined_call_operand.vmem [shape: f32[1,128], index: 15, kind: input, shape index: {}]   ;;  %s3172_s16 = inlined_call_operand.vmem [shape: f32[32,64], index: 16, kind: input, shape index: {}]   ;;  %s3173_s17 = inlined_call_operand.vmem [shape: f32[32,1], index: 17, kind: input, shape index: {}]   ;;  %s3174_s18 = inlined_call_operand.vmem [shape: f32[64,32], index: 18, kind: input, shape index: {}]   ;;  %s3175_s19 = inlined_call_operand.vmem [shape: f32[1,32], index: 19, kind: input, shape index: {}]   ;;  %s3176_s20 = inlined_call_operand.hbm [shape: f32[2,1,128], index: 20, kind: output, shape index: {0}]   ;;  %s3177_s21 = inlined_call_operand.hbm [shape: f32[2,1,128], index: 21, kind: output, shape index: {1}]  }
   0x1   :  { %3197 = sst [smem:[#allocation26_spill]] %s3156_s0 }
   0x2   :  { %3198 = sst [smem:[#allocation27_spill]] %s3157_s1 }
   0x3   :  { %3199 = sst [smem:[#allocation28_spill]] %s3158_s2 }
   0x4   :  { %3200 = sst [smem:[#allocation29_spill]] %s3159_s3 }
   0x5   :  { %3201 = sst [smem:[#allocation30_spill]] %s3160_s4 }
   0x6   :  { %3202 = sst [smem:[#allocation31_spill]] %s3161_s5 }
   0x7   :  { %3203 = sst [smem:[#allocation32_spill]] %s3166_s10 }
   0x8   :  { %3204 = sst [smem:[#allocation33_spill]] %s3167_s11 }
   0x9   :  { %3205 = sst [smem:[#allocation34_spill]] %s3168_s12 }
   0xa   :  { %3206 = sst [smem:[#allocation35_spill]] %s3169_s13 }
   0xb   :  { %3207 = sst [smem:[#allocation36_spill]] %s3170_s14 }
   0xc   :  { %3208 = sst [smem:[#allocation37_spill]] %s3171_s15 }
   0xd   :  { %3209 = sst [smem:[#allocation38_spill]] %s3172_s16 }
   0xe   :  { %3210 = sst [smem:[#allocation39_spill]] %s3173_s17 }
   0xf   :  { %3211 = sst [smem:[#allocation40_spill]] %s3175_s19 }
  0x10   :  { %3212 = sst [smem:[#allocation41_spill]] %s3176_s20 }
  0x11   :  { %3213 = sst [smem:[#allocation42_spill]] %s3177_s21 }
  0x12   :  { %27 = vsyncpa [#allocation9], 0 }
  0x13   :  { %29 = vsyncpa [#allocation9 + $0x1], 0 }
  0x14   :  { %30 = vsyncpa [#allocation11], 0 }
  0x15   :  { %32 = vsyncpa [#allocation11 + $0x1], 0  ;;  %s2742_s2 = smov 0   ;;  %s2744_s25 = smov 0  }
  0x16   :  { %s2746_s26 = smov 0   ;;  %s2748_s27 = smov 0  }
  0x17   :  { %s2750_s3 = smov 0   ;;  %s2752_s28 = smov 0  }
  0x18   :  { %s2754_s29 = smov 0   ;;  %s2756_s0 = smov 0  }
  0x19 LB: > { %3214 = sst [smem:[#allocation14_spill]] %s2581_s2  ;;  %s2087_s4 = sadd.s32 4294967295, %s2609_s0   ;;  %s2609_s0 = sphi %s2756_s0, %s38_s0   ;;  %s2605_s29 = sphi %s2754_s29, %s3265_s29   ;;  %s2601_s28 = sphi %s2752_s28, %s3264_s28   ;;  %s2597_s3 = sphi %s2750_s3, %s3263_s3   ;;  %s2593_s27 = sphi %s2748_s27, %s3262_s27   ;;  %s2589_s26 = sphi %s2746_s26, %s3261_s26   ;;  %s2585_s25 = sphi %s2744_s25, %s3260_s25   ;;  %s2581_s2 = sphi %s2742_s2, %s3259_s2  }
  0x1a   : > { %3215 = sst [smem:[#allocation15_spill]] %s2585_s25  ;;  %s2088_s30 = sadd.s32 4294967294, %s2609_s0  }
  0x1b   : > { %3216 = sst [smem:[#allocation16_spill]] %s2589_s26  ;;  %s53_s5 = sadd.s32 1, %s2601_s28 }
  0x1c   : > { %3217 = sst [smem:[#allocation17_spill]] %s2597_s3  ;;  %p55_p0 = scmp.ge.s32.totalorder %s53_s5, 2 }
  0x1d   : > { %3218 = sst [smem:[#allocation18_spill]] %s2601_s28  ;;  %s57_s22 = sadd.s32 1, %s2605_s29 }
  0x1e   : > { %3219 = sst [smem:[#allocation19_spill]] %s2605_s29  ;;  %p568_p1 = scmp.ne.s32.totalorder %s2589_s26, %s2585_s25 }
  0x1f   : > { %3220 = sst [smem:[#allocation20_spill]] %s2609_s0  ;;  %p569_p2 = scmp.eq.s32.totalorder %s2087_s4, 3 }
  0x20   : > { %s3267_s5 = smov (%p55_p0, %s53_s5), 0  ;;  %s3269_s22 = smov (!%p55_p0, %s57_s22), %s2605_s29 }
  0x21   : > { %3221 = sst [smem:[#allocation21_spill]] %s3267_s5  ;;  %p2791_p3 = por %p569_p2, %p568_p1 }
  0x22   : > { %p574_p4 = scmp.ne.s32.totalorder %s2585_s25, %s2581_s2  ;;  %p59_p5 = scmp.ge.s32.totalorder %s3269_s22, 2 }
  0x23   : > { %s3222_s23 = scalar_select %p2791_p3, 1, 0 }
  0x24   : > { %p575_p6 = scmp.eq.s32.totalorder %s2088_s30, 3  ;;  %p2094_p7 = scmp.ge.s32.totalorder %s2609_s0, 1 }
  0x25   : > { %3223 = sst [smem:[#allocation22_spill]] %s3222_s23  ;;  %p731_p8 = scmp.lt.s32.totalorder %s2609_s0, 5 }
  0x26   : > { %s3271_s22 = smov (%p59_p5, %s3269_s22), 0  ;;  %p2801_p9 = por %p575_p6, %p574_p4 }
  0x27   : > { %3224 = sst [smem:[#allocation23_spill]] %s3271_s22  ;;  %p732_p10 = pnand %p2094_p7, %p731_p8 }
  0x28   : > { %s3225_s1 = scalar_select %p2801_p9, 1, 0 }
  0x29   : > { %s553_s24 = ssub.s32 %s2605_s29, %s3271_s22  ;;  %s558_s4 = sadd.s32 1, %s2589_s26 }
  0x2a   : > { %3226 = sst [smem:[#allocation24_spill]] %s3225_s1  ;;  %p556_p11 = scmp.eq.s32.totalorder %s553_s24, 0 }
  0x2b   : > { %735 = sbr.rel (%p732_p10) target bundleno = 3054 (0xbee), region = 100  ;;  %s2812_s30 = sand.u32 (!%p732_p10), 1, %s2585_s25  }
  0x2c   : > { %s2809_s5 = scalar_select %p556_p11, %s2589_s26, %s558_s4  }
  0x2d   : > { %p836_p12 = scmp.lt.s32.totalorder (!%p732_p10), %s2597_s3, 1  ;;  %p889_p13 = scmp.eq.s32.totalorder (!%p732_p10), %s2593_s27, 0 }
  0x2e   : > { %3227 = sst [smem:[#allocation25_spill]] %s2809_s5  ;;  %s3229_s1 = sld [smem:[#allocation27_spill]] (!%p732_p10) }
  0x2f   : > { %s3230_s23 = sld [smem:[#allocation28_spill]] (!%p732_p10)  ;;  %s3231_s24 = sld [smem:[#allocation29_spill]] (!%p732_p10) }
  0x30   : > { %s3232_s13 = sld [smem:[#allocation30_spill]] (!%p732_p10)  ;;  %s3233_s26 = sld [smem:[#allocation31_spill]] (!%p732_p10) }
  0x31   : > { %s829_s15 = scalar_lea.vmem (!%p732_p10), [#allocation8], %s2812_s30 }
  0x32   : > { %s2816_s28 = scalar_select %p836_p12, %s2597_s3, 1 }
  0x33   : > { %894 = sbr.rel (!%p889_p13) target bundleno = 1507 (0x5e3), region = 104  ;;  %v897_v0 = vld [vmem:[%s3174_s18] sm:$0xff] (%p889_p13)  ;;  %v898_v1 = vld [vmem:[%s3174_s18 + $0x8] sm:$0xff] (%p889_p13)  ;;  %v899_v2 = vld [vmem:[%s3174_s18 + $0x10] sm:$0xff] (%p889_p13)  ;;  %v2611_v3 = vmov (%p889_p13), 0.0|0.0   ;;  %vm2612_vm0 = vmmov (%p889_p13), 0  }
  0x34   : > { %s2824_s5 = sshll.u32 %s2816_s28, 3  ;;  %s2123_s0 = sshll.u32 %s2816_s28, 6  ;;  %2291 = vmatprep.subr.bf16.mxu0 (%p889_p13), %v2611_v3  ;;  %v2292_v4 = vpack.c.bf16 (%p889_p13), %v898_v1, %v897_v0  ;;  %v900_v5 = vld [vmem:[%s3174_s18 + $0x18] sm:$0xff] (%p889_p13)  ;;  %v2613_v6 = vmov (%p889_p13), 0.0   ;;  %2303 = vmatprep.subr.bf16.mxu1 (%p889_p13), %v2611_v3  ;;  %v981_v8 = vld [vmem:[%s3165_s9] sm:$0xff] (%p889_p13)  ;;  %v982_v9 = vld [vmem:[%s3165_s9 + $0x8] sm:$0xff] (%p889_p13) }
  0x35   : > { %s2830_s2 = scalar_lea.vmem %s3229_s1, %s2824_s5  ;;  %s2836_s3 = scalar_lea.vmem %s3230_s23, %s2123_s0  ;;  %2195 = vmatprep.mubr.msk.f32.mxu0 (%p889_p13), %vm2612_vm0, %v2613_v6  ;;  %2218 = vmatprep.mubr.msk.f32.mxu1 (%p889_p13), %vm2612_vm0, %v2613_v6  ;;  %v2295_v7 = vpack.c.bf16 (%p889_p13), %v900_v5, %v899_v2  ;;  %v983_v10 = vld [vmem:[%s3165_s9 + $0x10] sm:$0xff] (%p889_p13)  ;;  %v901_v11 = vld [vmem:[%s3174_s18 + $0x20] sm:$0xff] (%p889_p13)  ;;  %v902_v12 = vld [vmem:[%s3174_s18 + $0x28] sm:$0xff] (%p889_p13)  ;;  %v2304_v13 = vpack.c.bf16 (%p889_p13), %v982_v9, %v981_v8  ;;  %vm908_vm1 = vcmask (%p889_p13), 523264   ;;  %vm992_vm2 = vcmask (%p889_p13), 654336  }
  0x36   : > { %s851_s22 = scalar_lea.vmem %s3231_s24, %s2824_s5  ;;  %s854_s17 = scalar_lea.vmem %s3232_s13, %s2816_s28  ;;  %2293 = vmatpush3.bf16.msra.mxu0 (%p889_p13), %v2292_v4  ;;  %v984_v14 = vld [vmem:[%s3165_s9 + $0x18] sm:$0xff] (%p889_p13)  ;;  %v2298_v16 = vpack.c.bf16 (%p889_p13), %v902_v12, %v901_v11  ;;  %v985_v17 = vld [vmem:[%s3165_s9 + $0x20] sm:$0xff] (%p889_p13)  ;;  %v986_v18 = vld [vmem:[%s3165_s9 + $0x28] sm:$0xff] (%p889_p13)  ;;  %vm1071_vm3 = vcmask (%p889_p13), 261120   ;;  %v2615_v11 = vmov (%p889_p13), 0   ;;  %vm1178_vm4 = vcmask (%p889_p13), 253952  }
  0x37   : > { %s857_s10 = scalar_lea.vmem %s3233_s26, %s2816_s28  ;;  %s860_s19 = scalar_lea.vmem %s3162_s6, %s2816_s28  ;;  %2294 = vmatprep.subr.bf16.mxu0 (%p889_p13), %v2611_v3  ;;  %2305 = vmatpush3.bf16.msra.mxu1 (%p889_p13), %v2304_v13  ;;  %v2307_v15 = vpack.c.bf16 (%p889_p13), %v984_v14, %v983_v10  ;;  %v903_v19 = vld [vmem:[%s3174_s18 + $0x30] sm:$0xff] (%p889_p13)  ;;  %v904_v20 = vld [vmem:[%s3174_s18 + $0x38] sm:$0xff] (%p889_p13)  ;;  %v2310_v21 = vpack.c.bf16 (%p889_p13), %v986_v18, %v985_v17  ;;  %v896_v23 = vld [vmem:[%s2830_s2] sm:$0xff] (%p889_p13)  ;;  %vm1392_vm5 = vcmask (%p889_p13), 57344   ;;  %vm1397_vm6 = vcmask (%p889_p13), 0  }
  0x38   : > { %s864_s21 = scalar_lea.vmem %s3163_s7, %s2824_s5  ;;  %s867_s14 = scalar_lea.vmem %s3164_s8, %s2816_s28  ;;  %2306 = vmatprep.subr.bf16.mxu1 (%p889_p13), %v2611_v3  ;;  %v2301_v22 = vpack.c.bf16 (%p889_p13), %v904_v20, %v903_v19  ;;  %v987_v24 = vld [vmem:[%s3165_s9 + $0x30] sm:$0xff] (%p889_p13)  ;;  %v988_v25 = vld [vmem:[%s3165_s9 + $0x38] sm:$0xff] (%p889_p13)  ;;  %v907_v28 = vrot.slane (%p889_p13), %v896_v23, 7  ;;  %v989_v31 = vld [vmem:[%s3165_s9 + $0x40] sm:$0xff] (%p889_p13)  ;;  %2448 = vset.pattern.permute.xlu1 (%p889_p13), %v2615_v11 }
  0x39   : > { %s835_s24 = scalar_lea.vmem [#allocation10], %s2812_s30  ;;  %s3234_s0 = sld [smem:[#allocation33_spill]] (%p889_p13)  ;;  %v2313_v29 = vpack.c.bf16 (%p889_p13), %v988_v25, %v987_v24  ;;  %v990_v32 = vld [vmem:[%s3165_s9 + $0x48] sm:$0xff] (%p889_p13)  ;;  %v1184_v44 = vld [vmem:[%s2836_s3] sm:$0xff] (%p889_p13)  ;;  %v1186_v57 = vld [vmem:[%s2836_s3 + $0x10] sm:$0xff] (%p889_p13)  ;;  %2447 = vset.pattern.permute.xlu0 (%p889_p13), %v2615_v11 }
  0x3a   : > { %2296 = vmatpush3.bf16.msra.mxu0 %v2295_v7  ;;  %v2316_v34 = vpack.c.bf16 %v990_v32, %v989_v31  ;;  %s3236_s16 = sld [smem:[#allocation26_spill]]  ;;  %s3238_s11 = sld [smem:[#allocation40_spill]]  ;;  %v1185_v45 = vld [vmem:[%s2836_s3 + $0x8] sm:$0xff]  ;;  %v1187_v58 = vld [vmem:[%s2836_s3 + $0x18] sm:$0xff]  ;;  %v1188_v60 = vld [vmem:[%s2836_s3 + $0x20] sm:$0xff] }
  0x3b   : > { %2297 = vmatprep.subr.bf16.mxu0 %v2611_v3  ;;  %2308 = vmatpush3.bf16.msra.mxu1 %v2307_v15  ;;  %v2324_v46 = vpack.c.bf16 %v1185_v45, %v1184_v44  ;;  %s3239_s1 = sld [smem:[#allocation34_spill]]  ;;  %s2614_s20 = smov 64   ;;  %v2328_v59 = vpack.c.bf16 %v1187_v58, %v1186_v57  ;;  %v1189_v61 = vld [vmem:[%s2836_s3 + $0x28] sm:$0xff]  ;;  %v1190_v63 = vld [vmem:[%s2836_s3 + $0x30] sm:$0xff]  ;;  %v1191_v0 = vld [vmem:[%s2836_s3 + $0x38] sm:$0xff] }
  0x3c   : > { %2309 = vmatprep.subr.bf16.mxu1 %v2611_v3  ;;  %v2332_v62 = vpack.c.bf16 %v1189_v61, %v1188_v60  ;;  %s3241_s4 = sld [smem:[#allocation38_spill]]  ;;  %v2336_v2 = vpack.c.bf16 %v1191_v0, %v1190_v63  ;;  %s2616_s25 = smov 96   ;;  %v1390_v45 = vld [vmem:[%s854_s17] sm:$0x1] }
  0x3d   : > { %s2617_s3 = smov 32  }
  0x3e   : > { %2299 = vmatpush3.bf16.msra.mxu0 %v2298_v16 }
  0x3f   : > { %2300 = vmatprep.subr.bf16.mxu0 %v2611_v3  ;;  %s3235_s23 = smov %s3234_s0  ;;  %v1066_v26 = vld [vmem:[%s3234_s0] sm:$0xff]  ;;  %2311 = vmatpush3.bf16.msra.mxu1 %v2310_v21 }
  0x40   : > { %v1067_v27 = vld [vmem:[%s3235_s23 + $0x8] sm:$0xff]  ;;  %2312 = vmatprep.subr.bf16.mxu1 %v2611_v3  ;;  %v1068_v33 = vld [vmem:[%s3235_s23 + $0x10] sm:$0xff]  ;;  %v1069_v35 = vld [vmem:[%s3235_s23 + $0x18] sm:$0xff]  ;;  %s3237_s29 = scalar_lea.vmem %s3236_s16, %s2816_s28  ;;  %s3240_s16 = sld [smem:[#allocation32_spill]] }
  0x41   : > { %v2319_v30 = vpack.c.bf16 %v1067_v27, %v1066_v26  ;;  %v2322_v36 = vpack.c.bf16 %v1069_v35, %v1068_v33  ;;  %v895_v37 = vld [vmem:[%s3237_s29] sm:$0x1]  ;;  %s3242_s29 = sld [smem:[#allocation39_spill]] }
  0x42   : > { %2302 = vmatpush3.bf16.msra.mxu0 %v2301_v22  ;;  %v905_v38 = vld [vmem:[%s3238_s11] sm:$0x1]  ;;  %v1181_v4 = vld [vmem:[%s3241_s4 + $0x8] sm:$0xff]  ;;  %v1182_v8 = vld [vmem:[%s3241_s4 + $0x10] sm:$0xff] }
  0x43   : > { %2318 = vmatprep.subr.bf16.mxu0 %v2611_v3  ;;  %2314 = vmatpush3.bf16.msra.mxu1 %v2313_v29  ;;  %v1070_v47 = vld [vmem:[%s3239_s1] sm:$0x1]  ;;  %v1183_v9 = vld [vmem:[%s3241_s4 + $0x18] sm:$0xff] }
  0x44   : > { %2315 = vmatprep.subr.bf16.mxu1 %v2611_v3  ;;  %v1180_v1 = vld [vmem:[%s3241_s4] sm:$0xff] }
  0x45   : > { %2196 = vmatmul.mubr.msk.f32.vlgmr.msra.gmra.mrb[0].mxu0 %vm908_vm1, %v907_v28 }
  0x46   : > { %2320 = vmatpush3.bf16.msra.mxu0 %v2319_v30  ;;  %2229 = vmatprep.mubr.msk.f32.mxu0 %vm2612_vm0, %v2613_v6  ;;  %v991_v51 = vld [vmem:[%s3240_s16] sm:$0x1] }
  0x47   : > { %2321 = vmatprep.subr.bf16.mxu0 %v2611_v3  ;;  %2317 = vmatpush3.bf16.msra.mxu1 %v2316_v34  ;;  %s3243_s12 = smov %s3242_s29  ;;  %v1192_v10 = vld [vmem:[%s3242_s29] sm:$0xff] }
  0x48   : > { %2325 = vmatprep.subr.bf16.mxu1 %v2324_v46  ;;  %v1195_v12 = vld [vmem:[%s3243_s12 + $0x18] sm:$0xff]  ;;  %v1193_v16 = vld [vmem:[%s3243_s12 + $0x8] sm:$0xff]  ;;  %v1194_v17 = vld [vmem:[%s3243_s12 + $0x10] sm:$0xff] }
  0x4a   : > { %2323 = vmatpush3.bf16.msra.mxu0 %v2322_v36  ;;  %2219 = vmatmul.mubr.msk.f32.vlgmr.msra.gmra.mrb[0].mxu1 %vm992_vm2, %v895_v37 }
  0x4b   : > { %2340 = vmatprep.subr.bf16.mxu0 %v2611_v3  ;;  %2327 = vmatpush3.bf16.msra.mxu1 %v2324_v46 }
  0x4c   : > { %2329 = vmatprep.subr.bf16.mxu1 %v2328_v59  ;;  %2248 = vmatprep.mubr.msk.f32.mxu1 %vm908_vm1, %v1180_v1 }
  0x4f   : > { %2331 = vmatpush3.bf16.msra.mxu1 %v2328_v59 }
  0x50   : > { %2333 = vmatprep.subr.bf16.mxu1 %v2332_v62 }
  0x53   : > { %2335 = vmatpush3.bf16.msra.mxu1 %v2332_v62 }
  0x54   : > { %2337 = vmatprep.subr.bf16.mxu1 %v2336_v2 }
  0x57   : > { %2339 = vmatpush3.bf16.msra.mxu1 %v2336_v2 }
  0x5a   : > { %2249 = vmatmul.mubr.msk.f32.vlgmr.msra.gmra.mrb[2].mxu1 %vm908_vm1, %v1181_v4 }
  0x5b   : > { %2251 = vmatprep.mubr.msk.f32.mxu1 %vm908_vm1, %v1182_v8 }
  0x5e   : > { %2252 = vmatmul.mubr.msk.f32.gmra.mrb[4].mxu1 %vm908_vm1, %v1183_v9 }
 0x118   : > { %v977_v39 = vpop.f32.mrb[0].mxu0 }
 0x119   : > { %v2960_v40 = vadd.f32 %v977_v39, %v905_v38  ;;  %v2197_v41 = vpop.f32.mrb[1].mxu0 }
 0x11b   : > { %2230 = vmatmul.mubr.msk.f32.vlgmr.msra.gmra.mrb[2].mxu0 %vm1071_vm3, %v2960_v40 }
 0x11c   : > { %2262 = vmatprep.mubr.msk.f32.mxu0 %vm2612_vm0, %v2613_v6 }
 0x11d   : > { %v1062_v42 = vpop.f32.mrb[0].mxu1 }
 0x11e   : > { %v2220_v43 = vpop.f32.mrb[1].mxu1  ;;  %v1063_v52 = vadd.f32 %v1062_v42, %v991_v51 }
 0x12d   : > { %v2250_v18 = vpop.f32.mrb[2].mxu1 }
 0x12e   : > { %v1294_v19 = vpop.f32.mrb[3].mxu1 }
 0x131   : > { %v2253_v20 = vpop.f32.mrb[4].mxu1 }
 0x132   : > { %v1304_v21 = vpop.f32.mrb[5].mxu1 }
 0x1ee   : > { %v1141_v48 = vpop.f32.mrb[2].mxu0 }
 0x1ef   : > { %v1142_v49 = vadd.f32 %v1141_v48, %v1070_v47  ;;  %v2231_v50 = vpop.f32.mrb[3].mxu0 }
 0x1f1   : > { %1153 = vrot.lane.b32.xlu0 %v1142_v49, %s2614_s20  ;;  %v1145_v53 = vadd.f32 %v1142_v49, %v1063_v52 }
 0x1f3   : > { %v2104_v54 = vmul.f32 -1.442695, %v1145_v53 }
 0x1f5   : > { %2449 = vpow2.f32 %v2104_v54 }
 0x1ff   : > { %v2450_v55 = vpop.eup %2449 }
 0x200   : > { %v1149_v56 = vadd.f32 1.0, %v2450_v55 }
 0x202   : > { %2451 = vrcp.f32 %v1149_v56 }
 0x20c   : > { %v2452_v5 = vpop.eup %2451 }
 0x20d   : > { %v1163_v23 = vsub.f32 1.0, %v2452_v5 }
 0x263   : > { %v1154_v6 = vpop.permute.xlu0 %1153 }
 0x264   : > { %v1156_v7 = vmul.f32 %v2452_v5, %v1154_v6 }
 0x266   : > { %1158 = vrot.lane.b32.xlu0 %v1156_v7, %s2614_s20 }
 0x26a   : > { %1198 = vperm.xlu0 %2447, %v1192_v10  }
 0x26e   : > { %1213 = vperm.xlu0 %2447, %v1195_v12  }
 0x2d8   : > { %v1159_v13 = vpop.permute.xlu0 %1158 }
 0x2d9   : > { %v1161_v14 = vadd.f32 %v1159_v13, %v1063_v52 }
 0x2db   : > { %2453 = vtanh.f32 %v1161_v14 }
 0x2e5   : > { %v2454_v15 = vpop.eup %2453 }
 0x2e6   : > { %1165 = vrot.lane.b32.xlu1 %v2454_v15, %s2616_s25 }
 0x2e9   : > { %v1199_v28 = vpop.permute.xlu0 %1198 }
 0x2ea   : > { %1169 = vrot.lane.b32.xlu1 %v2960_v40, %s2617_s3  ;;  %v1295_v29 = vadd.f32 %v1294_v19, %v1199_v28 }
 0x2ec   : > { %2455 = vtanh.f32 %v1295_v29 }
 0x2ed   : > { %v1214_v30 = vpop.permute.xlu0 %1213 }
 0x2ee   : > { %1203 = vperm.xlu1 %2448, %v1193_v16   ;;  %v1310_v33 = vadd.f32 %v2253_v20, %v1214_v30 }
 0x2f2   : > { %1208 = vperm.xlu1 %2448, %v1194_v17  }
 0x2f6   : > { %v2456_v36 = vpop.eup %2455 }
 0x358   : > { %v1166_v22 = vpop.permute.xlu1 %1165 }
 0x359   : > { %v1168_v25 = vmul.f32 %v1166_v22, %v1163_v23 }
 0x35c   : > { %v1170_v24 = vpop.permute.xlu1 %1169 }
 0x35d   : > { %v1172_v26 = vmul.f32 %v2452_v5, %v1170_v24 }
 0x35f   : > { %v1173_v27 = vadd.f32 %v1172_v26, %v1168_v25 }
 0x361   : > { %1175 = vrot.lane.b32.xlu1 %v1173_v27, %s2616_s25 }
 0x36d   : > { %v1204_v31 = vpop.permute.xlu1 %1203 }
 0x36e   : > { %v1300_v32 = vadd.f32 %v2250_v18, %v1204_v31 }
 0x370   : > { %2457 = vtanh.f32 %v1300_v32 }
 0x371   : > { %v1209_v34 = vpop.permute.xlu1 %1208  ;;  %2459 = vtanh.f32 %v1310_v33 }
 0x372   : > { %v1305_v35 = vadd.f32 %v1304_v21, %v1209_v34 }
 0x374   : > { %2461 = vtanh.f32 %v1305_v35 }
 0x37a   : > { %v2458_v37 = vpop.eup %2457 }
 0x37b   : > { %v2341_v38 = vpack.c.bf16 %v2458_v37, %v2456_v36  ;;  %v2460_v39 = vpop.eup %2459 }
 0x37d   : > { %2342 = vmatpush3.bf16.msra.mxu0 %v2341_v38 }
 0x37e   : > { %v2462_v40 = vpop.eup %2461  ;;  %2343 = vmatprep.subr.bf16.mxu0 %v2611_v3 }
 0x37f   : > { %v2344_v41 = vpack.c.bf16 %v2460_v39, %v2462_v40 }
 0x381   : > { %2345 = vmatpush3.bf16.msra.mxu0 %v2344_v41 }
 0x3d3   : > { %v1176_v42 = vpop.permute.xlu1 %1175 }
 0x3d4   : > { %1179 = vst.msk [vmem:[#allocation2] sm:$0x1] %vm1178_vm4, %v1176_v42  ;;  %2263 = vmatmul.mubr.msk.f32.vlgmr.msra.gmra.mrb[4].mxu0 %vm1071_vm3, %v1176_v42 }
 0x4a7   : > { %v1385_v43 = vpop.f32.mrb[4].mxu0 }
 0x4a8   : > { %2463 = vtanh.f32 %v1385_v43  ;;  %v2264_v44 = vpop.f32.mrb[5].mxu0 }
 0x4b2   : > { %v2464_v46 = vpop.eup %2463 }
 0x4b3   : > { %v1391_v47 = vadd.f32 %v2464_v46, %v1390_v45 }
 0x4b5   : > { %v1394_v48 = vsel %vm1392_vm5, %v1391_v47, -inf  ;;  %1393 = vst.msk [vmem:[#allocation3] sm:$0x1] %vm1392_vm5, %v1391_v47 }
 0x4b6   : > { %1395 = vmax.xlane.f32.xlu0 %v1394_v48 }
 0x543   : > { %v1396_v3 = vpop.xlane.xlu0 %1395 }
 0x544   : > { %1398 = vst.msk [vmem:[#allocation4] sm:$0x1] %vm1397_vm6, %v1396_v3  ;;  %v1399_v49 = vsub.f32 %v1391_v47, %v1396_v3 }
 0x546   : > { %v1400_v50 = vmul.f32 1.442695, %v1399_v49 }
 0x548   : > { %2465 = vpow2.f32 %v1400_v50 }
 0x552   : > { %v2466_v51 = vpop.eup %2465 }
 0x553   : > { %v1402_v52 = vsel %vm1392_vm5, %v2466_v51, 0.0 }
 0x554   : > { %1403 = vadd.xlane.f32.xlu1 %v1402_v52 }
 0x5e1   : > { %v1404_v53 = vpop.xlane.xlu1 %1403 }
 0x5e2   : > { %1405 = vst.msk [vmem:[#allocation5] sm:$0x1] %vm1397_vm6, %v1404_v53 }
 0x5e3 PF: > { %p2110_p0 = scmp.ne.s32.totalorder %s2593_s27, 0 }
 0x5e4   : > { %s3245_s25 = sld [smem:[#allocation35_spill]] (!%p2110_p0)  ;;  %v2618_v57 = vmov (!%p2110_p0), 0.0|0.0   ;;  %vm2619_vm7 = vmmov (!%p2110_p0), 0   ;;  %v2620_v60 = vmov (!%p2110_p0), 0.0   ;;  %v1409_v62 = vld [vmem:[#allocation2] sm:$0x1] (!%p2110_p0)  ;;  %v1507_v10 = vlaneseq (!%p2110_p0) }
 0x5e5   : > { %1408 = sbr.rel (%p2110_p0) target bundleno = 2175 (0x87f), region = 108  ;;  %2346 = vmatprep.subr.bf16.mxu0 (!%p2110_p0), %v2618_v57  ;;  %2273 = vmatprep.mubr.msk.f32.mxu0 (!%p2110_p0), %vm2619_vm7, %v2620_v60  ;;  %vm1415_vm8 = vcmask (!%p2110_p0), 261120   ;;  %s3247_s11 = sld [smem:[#allocation36_spill]] (!%p2110_p0)  ;;  %vm1492_vm9 = vcmask (!%p2110_p0), 1040384   ;;  %v2621_v5 = vmov (!%p2110_p0), 0   ;;  %vm1518_vm10 = vcmask (!%p2110_p0), 0  }
 0x5e6   : > { %2467 = vset.pattern.permute.xlu0 (!%p2110_p0), %v2621_v5  ;;  %v1491_v6 = vld [vmem:[#allocation4] sm:$0x1] (!%p2110_p0)  ;;  %v1508_v11 = vshrl.u32 (!%p2110_p0), %v1507_v10, 7 }
 0x5e8   : > { %v1509_v12 = vsub.s32 (!%p2110_p0), 0, %v1508_v11 }
 0x5e9   : > { %v1497_v21 = vld [vmem:[#allocation5] sm:$0x1] (!%p2110_p0) }
 0x5ea   : > { %s3246_s1 = smov (!%p2110_p0), %s3245_s25  ;;  %v1410_v54 = vld [vmem:[%s3245_s25] sm:$0xff] (!%p2110_p0) }
 0x5eb   : > { %v1411_v55 = vld [vmem:[%s3246_s1 + $0x8] sm:$0xff] (!%p2110_p0)  ;;  %v1412_v56 = vld [vmem:[%s3246_s1 + $0x10] sm:$0xff] (!%p2110_p0)  ;;  %v1413_v59 = vld [vmem:[%s3246_s1 + $0x18] sm:$0xff] (!%p2110_p0) }
 0x5ec   : > { %v2347_v58 = vpack.c.bf16 %v1411_v55, %v1410_v54  ;;  %v2350_v61 = vpack.c.bf16 %v1413_v59, %v1412_v56  ;;  %v1414_v63 = vld [vmem:[%s3247_s11] sm:$0x1] }
 0x5ee   : > { %2348 = vmatpush3.bf16.msra.mxu0 %v2347_v58 }
 0x5ef   : > { %2349 = vmatprep.subr.bf16.mxu0 %v2618_v57 }
 0x5f2   : > { %2351 = vmatpush3.bf16.msra.mxu0 %v2350_v61 }
 0x5f5   : > { %2274 = vmatmul.mubr.msk.f32.vlgmr.msra.gmra.mrb[0].mxu0 %vm1415_vm8, %v1409_v62 }
 0x6c8   : > { %v1485_v0 = vpop.f32.mrb[0].mxu0 }
 0x6c9   : > { %v1486_v1 = vadd.f32 %v1485_v0, %v1414_v63  ;;  %v2275_v2 = vpop.f32.mrb[1].mxu0 }
 0x6cb   : > { %1490 = vst [vmem:[#allocation7] sm:$0x1] %v1486_v1  ;;  %v1493_v4 = vsel %vm1492_vm9, %v1486_v1, -inf }
 0x6cc   : > { %1494 = vmax.xlane.f32.xlu0 %v1493_v4 }
 0x759   : > { %v1495_v7 = vpop.xlane.xlu0 %1494 }
 0x75a   : > { %v1496_v8 = vmax.f32 %v1491_v6, %v1495_v7 }
 0x75c   : > { %v1498_v9 = vsub.f32 %v1491_v6, %v1496_v8  ;;  %1520 = vst.msk [vmem:[#allocation4] sm:$0x1] %vm1518_vm10, %v1496_v8  ;;  %1504 = vperm.xlu0 %2467, %v1496_v8  }
 0x75e   : > { %v1499_v19 = vmul.f32 1.442695, %v1498_v9 }
 0x7db   : > { %v1505_v13 = vpop.permute.xlu0 %1504 }
 0x7dc   : > { %v1510_v14 = vrot.slane %v1505_v13, %v1509_v12 }
 0x7de   : > { %v1511_v15 = vsub.f32 %v1486_v1, %v1510_v14 }
 0x7e0   : > { %v1512_v16 = vmul.f32 1.442695, %v1511_v15 }
 0x7e2   : > { %2468 = vpow2.f32 %v1512_v16 }
 0x7e3   : > { %2470 = vpow2.f32 %v1499_v19 }
 0x7ec   : > { %v2469_v17 = vpop.eup %2468 }
 0x7ed   : > { %v1514_v18 = vsel %vm1492_vm9, %v2469_v17, 0.0  ;;  %v2471_v20 = vpop.eup %2470 }
 0x7ee   : > { %1515 = vadd.xlane.f32.xlu1 %v1514_v18  ;;  %v1501_v22 = vmul.f32 %v2471_v20, %v1497_v21 }
 0x87b   : > { %v1516_v23 = vpop.xlane.xlu1 %1515 }
 0x87c   : > { %v1517_v24 = vadd.f32 %v1516_v23, %v1501_v22 }
 0x87e   : > { %1519 = vst.msk [vmem:[#allocation5] sm:$0x1] %vm1518_vm10, %v1517_v24 }
 0x87f PF: > { %p1521_p1 = scmp.eq.s32.totalorder %s2593_s27, 1 }
 0x880   : > { %v1529_v25 = vld [vmem:[#allocation4] sm:$0x1] (%p1521_p1)  ;;  %v2622_v27 = vmov (%p1521_p1), 0   ;;  %v2623_v29 = vmov (%p1521_p1), 0.0   ;;  %vm2624_vm11 = vmmov (%p1521_p1), 0   ;;  %v1535_v32 = vlaneseq (%p1521_p1) }
 0x881   : > { %1525 = sbr.rel (!%p1521_p1) target bundleno = 2657 (0xa61), region = 112  ;;  %2472 = vset.pattern.permute.xlu0 (%p1521_p1), %v2622_v27  ;;  %2276 = vmatprep.subr.mxu0 (%p1521_p1), %v2623_v29  ;;  %v1552_v30 = vld [vmem:[%s864_s21] sm:$0xff] (%p1521_p1)  ;;  %vm1553_vm12 = vcmask (%p1521_p1), 64512   ;;  %vm1635_vm13 = vcmask (%p1521_p1), 57344   ;;  %vm1718_vm14 = vcmask (%p1521_p1), 261120   ;;  %vm1720_vm15 = vcmask (%p1521_p1), 785408  }
 0x882   : > { %1532 = vperm.xlu0 (%p1521_p1), %2472, %v1529_v25   ;;  %2281 = vmatprep.subr.mxu1 (%p1521_p1), %v2623_v29  ;;  %v1639_v31 = vld [vmem:[%s2830_s2] sm:$0xff] (%p1521_p1)  ;;  %v1536_v33 = vshrl.u32 (%p1521_p1), %v1535_v32, 7 }
 0x883   : > { %2277 = vmatpush3.msra.mxu0 (%p1521_p1), %v1552_v30  ;;  %2278 = vmatprep.mubr.msk.f32.mxu0 (%p1521_p1), %vm2624_vm11, %v2623_v29  ;;  %v1528_v36 = vld [vmem:[#allocation3] sm:$0x1] (%p1521_p1)  ;;  %v1637_v43 = vld [vmem:[%s867_s14] sm:$0x1] (%p1521_p1)  ;;  %s2625_s14 = smov (%p1521_p1), 32  }
 0x884   : > { %2283 = vmatprep.mubr.msk.f32.mxu1 (%p1521_p1), %vm2624_vm11, %v2623_v29  ;;  %2282 = vmatpush3.msra.mxu1 (%p1521_p1), %v1639_v31  ;;  %v1537_v34 = vsub.s32 (%p1521_p1), 0, %v1536_v33  ;;  %v1627_v46 = vld [vmem:[%s857_s10] sm:$0x1] (%p1521_p1) }
 0x885   : > { %v1526_v26 = vld [vmem:[#allocation5] sm:$0x1] (%p1521_p1)  ;;  %v1628_v47 = vsub.f32 (%p1521_p1), 1.0, %v1627_v46  ;;  %v1633_v52 = vld [vmem:[%s860_s19] sm:$0x1] (%p1521_p1) }
 0x886   : > { %2473 = vrcp.f32 (%p1521_p1), %v1526_v26  ;;  %v1713_v57 = vld [vmem:[#allocation2] sm:$0x1] (%p1521_p1) }
 0x890   : > { %v2474_v28 = vpop.eup %2473 }
 0x891   : > { %1544 = vperm.xlu0 %2472, %v2474_v28  }
 0x901   : > { %v1533_v35 = vpop.permute.xlu0 %1532 }
 0x902   : > { %v1538_v37 = vrot.slane %v1533_v35, %v1537_v34 }
 0x904   : > { %v1539_v38 = vsub.f32 %v1528_v36, %v1538_v37 }
 0x906   : > { %v1540_v39 = vmul.f32 1.442695, %v1539_v38 }
 0x908   : > { %2475 = vpow2.f32 %v1540_v39 }
 0x910   : > { %v1545_v40 = vpop.permute.xlu0 %1544 }
 0x911   : > { %v1550_v41 = vrot.slane %v1545_v40, %v1537_v34 }
 0x912   : > { %v2476_v42 = vpop.eup %2475 }
 0x913   : > { %v1551_v44 = vmul.f32 %v2476_v42, %v1550_v41 }
 0x915   : > { %2279 = vmatmul.mubr.msk.f32.vlgmr.msra.gmra.mrb[0].mxu0 %vm1553_vm12, %v1551_v44  ;;  %v1638_v45 = vmul.f32 %v1637_v43, %v1551_v44  ;;  %v1630_v48 = vmul.f32 %v1627_v46, %v1551_v44  ;;  %v1629_v49 = vmul.f32 %v1628_v47, %v1551_v44 }
 0x917   : > { %2284 = vmatmul.mubr.msk.f32.vlgmr.msra.gmra.mrb[0].mxu1 %vm1553_vm12, %v1638_v45 }
 0x9e8   : > { %v1623_v3 = vpop.f32.mrb[0].mxu0 }
 0x9e9   : > { %v1631_v50 = vmul.f32 %v1630_v48, %v1623_v3  ;;  %v2280_v51 = vpop.f32.mrb[1].mxu0 }
 0x9ea   : > { %v1709_v53 = vpop.f32.mrb[0].mxu1 }
 0x9eb   : > { %v1632_v54 = vadd.f32 %v1631_v50, %v1629_v49  ;;  %1715 = vrot.lane.b32.xlu1 %v1709_v53, %s2625_s14  ;;  %v2285_v55 = vpop.f32.mrb[1].mxu1 }
 0x9ed   : > { %v1634_v56 = vmul.f32 %v1633_v52, %v1632_v54 }
 0x9ef   : > { %1636 = vst.msk [vmem:[#allocation6] sm:$0x1] %vm1635_vm13, %v1634_v56 }
 0xa5d   : > { %v1716_v58 = vpop.permute.xlu1 %1715 }
 0xa5e   : > { %v1719_v59 = vsel %vm1718_vm14, %v1713_v57, %v1716_v58 }
 0xa5f   : > { %v1721_v60 = vsel %vm1720_vm15, %v1719_v59, 0.0 }
 0xa60   : > { %1722 = vst [vmem:[%s835_s24] sm:$0x1] %v1721_v60 }
 0xa61 PF: > { %p2115_p2 = scmp.ne.s32.totalorder %s2593_s27, 1 }
 0xa62   : > { %v1758_v61 = vld [vmem:[%s851_s22] sm:$0xff] (!%p2115_p2)  ;;  %v2626_v63 = vmov (!%p2115_p2), 0   ;;  %v2627_v0 = vmov (!%p2115_p2), 0.0   ;;  %vm2628_vm0 = vmmov (!%p2115_p2), 0   ;;  %v1736_v4 = vlaneseq (!%p2115_p2)  ;;  %s3250_s22 = sld [smem:[#allocation37_spill]] (!%p2115_p2) }
 0xa63   : > { %1725 = sbr.rel (%p2115_p2) target bundleno = 3005 (0xbbd), region = 116  ;;  %v1726_v62 = vld [vmem:[#allocation5] sm:$0x1] (!%p2115_p2)  ;;  %2477 = vset.pattern.permute.xlu0 (!%p2115_p2), %v2626_v63  ;;  %2478 = vset.pattern.permute.xlu1 (!%p2115_p2), %v2626_v63  ;;  %v1730_v1 = vld [vmem:[#allocation4] sm:$0x1] (!%p2115_p2)  ;;  %vm1766_vm1 = vcmask (!%p2115_p2), 64512  }
 0xa64   : > { %2479 = vrcp.f32 (!%p2115_p2), %v1726_v62  ;;  %1760 = vperm.xlu0 (!%p2115_p2), %2477, %v1758_v61   ;;  %2286 = vmatprep.subr.mxu0 (!%p2115_p2), %v2627_v0  ;;  %v1755_v5 = vand.u32 (!%p2115_p2), 127, %v1736_v4  ;;  %v1765_v7 = vld [vmem:[#allocation6] sm:$0x1] (!%p2115_p2)  ;;  %v2629_v8 = vmov (!%p2115_p2), 1.0   ;;  %v1737_v9 = vshrl.u32 (!%p2115_p2), %v1736_v4, 7 }
 0xa65   : > { %2288 = vmatprep.mubr.msk.f32.mxu0 (!%p2115_p2), %vm2628_vm0, %v2627_v0  ;;  %v1729_v13 = vld [vmem:[#allocation7] sm:$0x1] (!%p2115_p2) }
 0xa66   : > { %v1738_v10 = vsub.s32 (!%p2115_p2), 0, %v1737_v9 }
 0xa68   : > { %1733 = vperm.xlu0 (!%p2115_p2), %2477, %v1730_v1   ;;  %v1840_v20 = vld [vmem:[%s3250_s22] sm:$0x1] (!%p2115_p2) }
 0xa6e   : > { %v2480_v2 = vpop.eup %2479 }
 0xa6f   : > { %1745 = vperm.xlu1 %2478, %v2480_v2  }
 0xae3   : > { %v1761_v6 = vpop.permute.xlu0 %1760 }
 0xae4   : > { %vm1762_vm2 = vcmp.eq.s32.totalorder %v1761_v6, %v1755_v5 }
 0xae5   : > { %2287 = vmatpush3.msk.msra.mxu0 %vm1762_vm2, %v2629_v8 }
 0xae6   : > { %2289 = vmatmul.mubr.msk.f32.vlgmr.msra.gmra.mrb[0].mxu0 %vm1766_vm1, %v1765_v7 }
 0xae7   : > { %v1734_v11 = vpop.permute.xlu0 %1733 }
 0xae8   : > { %v1739_v12 = vrot.slane %v1734_v11, %v1738_v10 }
 0xaea   : > { %v1740_v14 = vsub.f32 %v1729_v13, %v1739_v12 }
 0xaec   : > { %v1741_v15 = vmul.f32 1.442695, %v1740_v14 }
 0xaee   : > { %2481 = vpow2.f32 %v1741_v15  ;;  %v1746_v16 = vpop.permute.xlu1 %1745 }
 0xaef   : > { %v1751_v17 = vrot.slane %v1746_v16, %v1738_v10 }
 0xaf8   : > { %v2482_v18 = vpop.eup %2481 }
 0xaf9   : > { %v1752_v19 = vmul.f32 %v2482_v18, %v1751_v17 }
 0xafb   : > { %v1841_v21 = vadd.f32 %v1840_v20, %v1752_v19 }
 0xbb9   : > { %v1836_v22 = vpop.f32.mrb[0].mxu0 }
 0xbba   : > { %v1842_v23 = vadd.f32 %v1841_v21, %v1836_v22  ;;  %v2290_v24 = vpop.f32.mrb[1].mxu0 }
 0xbbc   : > { %1843 = vst [vmem:[%s829_s15] sm:$0x1] %v1842_v23 }
 0xbbd PF: > { %s3251_s20 = sld [smem:[#allocation17_spill]]  ;;  %s3253_s21 = sld [smem:[#allocation41_spill]] }
 0xbbe   : > { %s1863_s26 = sshll.u32 %s829_s15, 4  ;;  %s1845_s0 = scalar_lea.sflag [#allocation9], %s2812_s30  ;;  %s1864_s26 = int_to_ptr.vmem [resolvable:$true] %s1863_s26 }
 0xbbf   : > { %s2483_s13 = scalar_lea.vmem %s1864_s26, 16  ;;  %s2630_s16 = smov [#allocation8]  }
 0xbc0   : > { %p2484_p4 = scmp.ne.s32.totalorder %s1864_s26, %s2483_s13  ;;  %s2487_s29 = sshll.u32 %s2630_s16, 4  ;;  %s2488_s29 = int_to_ptr.vmem [resolvable:$false] %s2487_s29 }
 0xbc1   : > { %s2489_s14 = scalar_lea.vmem %s2488_s29, 32  ;;  %p2490_p7 = scmp.lt.s32.totalorder %s1864_s26, %s2488_s29 }
 0xbc2   : > { %p2485_p5 = pnand %p2484_p4, %p2791_p3  ;;  %p2491_p8 = scmp.lt.s32.totalorder %s2489_s14, %s2483_s13 }
 0xbc3   : > { %s2119_s11 = sshll.u32 %s3251_s20, 4 }
 0xbc4   : > { %s3079_s2 = scalar_lea.hbm %s3253_s21, %s2119_s11  ;;  %p2486_p6 = pneg %p2485_p5 }
 0xbc5   : > { %p2492_p10 = por %p2491_p8, %p2490_p7 }
 0xbc7   : > { %p2493_p11 = pnand %p2492_p10, %p2486_p6 }
 0xbc9   : > { %2496 = shalt.err (!%p2493_p11)
}
 0xbca   : > { %s2497_s15 = scalar_lea.hbm %s3079_s2, 16  ;;  %s2501_s28 = scalar_lea.hbm %s3253_s21, 32 }
 0xbcb   : > { %p2498_p12 = scmp.ne.s32.totalorder %s3079_s2, %s2497_s15  ;;  %p2502_p1 = scmp.lt.u32.totalorder %s3079_s2, %s3253_s21 }
 0xbcc   : > { %p2503_p2 = scmp.lt.u32.totalorder %s2501_s28, %s2497_s15  ;;  %p2505_p5 = scmp.lt.u32.totalorder %s2497_s15, %s3079_s2 }
 0xbcd   : > { %p2499_p13 = pnand %p2498_p12, %p2791_p3 }
 0xbce   : > { %p2504_p4 = por %p2503_p2, %p2502_p1 }
 0xbcf   : > { %p2500_p0 = pneg %p2499_p13 }
 0xbd0   : > { %p2506_p6 = por %p2505_p5, %p2504_p4 }
 0xbd2   : > { %p2507_p7 = pnand %p2506_p6, %p2500_p0 }
 0xbd4   : > { %2510 = shalt.err (!%p2507_p7)
}
 0xbd5   : > { %2352 = dma.vmem_to_hbm [thread:$0]  (%p2791_p3), %s1864_s26, 16, %s3079_s2, %s1845_s0  }
 0xbd6   : > { %s3254_s3 = sld [smem:[#allocation42_spill]]  ;;  %s1876_s29 = sshll.u32 %s835_s24, 4  ;;  %s1877_s29 = int_to_ptr.vmem [resolvable:$true] %s1876_s29 }
 0xbd7   : > { %s1849_s14 = scalar_lea.sflag [#allocation11], %s2812_s30  ;;  %s2511_s15 = scalar_lea.vmem %s1877_s29, 16 }
 0xbd8   : > { %p2512_p8 = scmp.ne.s32.totalorder %s1877_s29, %s2511_s15  ;;  %s2631_s10 = smov [#allocation10]  }
 0xbd9   : > { %s2515_s19 = sshll.u32 %s2631_s10, 4  ;;  %s2516_s19 = int_to_ptr.vmem [resolvable:$false] %s2515_s19 }
 0xbda   : > { %p2513_p10 = pnand %p2512_p8, %p2791_p3  ;;  %s2517_s28 = scalar_lea.vmem %s2516_s19, 32 }
 0xbdb   : > { %p2518_p12 = scmp.lt.s32.totalorder %s1877_s29, %s2516_s19  ;;  %p2519_p13 = scmp.lt.s32.totalorder %s2517_s28, %s2511_s15 }
 0xbdc   : > { %s3255_s13 = smov %s3254_s3  ;;  %s3106_s16 = scalar_lea.hbm %s3254_s3, %s2119_s11 }
 0xbdd   : > { %p2514_p11 = pneg %p2513_p10  ;;  %p2520_p0 = por %p2519_p13, %p2518_p12 }
 0xbdf   : > { %p2521_p1 = pnand %p2520_p0, %p2514_p11 }
 0xbe1   : > { %2524 = shalt.err (!%p2521_p1)
}
 0xbe2   : > { %s2525_s30 = scalar_lea.hbm %s3106_s16, 16  ;;  %s2529_s11 = scalar_lea.hbm %s3255_s13, 32 }
 0xbe3   : > { %p2526_p2 = scmp.ne.s32.totalorder %s3106_s16, %s2525_s30  ;;  %p2530_p6 = scmp.lt.u32.totalorder %s3106_s16, %s3255_s13 }
 0xbe4   : > { %p2531_p7 = scmp.lt.u32.totalorder %s2529_s11, %s2525_s30  ;;  %p2533_p10 = scmp.lt.u32.totalorder %s2525_s30, %s3106_s16 }
 0xbe5   : > { %p2527_p4 = pnand %p2526_p2, %p2791_p3 }
 0xbe6   : > { %p2532_p8 = por %p2531_p7, %p2530_p6 }
 0xbe7   : > { %p2528_p5 = pneg %p2527_p4 }
 0xbe8   : > { %p2534_p11 = por %p2533_p10, %p2532_p8 }
 0xbea   : > { %p2535_p12 = pnand %p2534_p11, %p2528_p5 }
 0xbec   : > { %2538 = shalt.err (!%p2535_p12)
}
 0xbed   : > { %2353 = dma.vmem_to_hbm [thread:$0]  (%p2791_p3), %s1877_s29, 16, %s3106_s16, %s1849_s14  }
 0xbee PF: > { %s3256_s0 = sld [smem:[#allocation20_spill]]  ;;  %s3257_s27 = sld [smem:[#allocation14_spill]] }
 0xbf4   : > { %p2363_p13 = scmp.ge.s32.totalorder %s3256_s0, 2  ;;  %s1888_s22 = sand.u32 1, %s3257_s27  }
 0xbf5   : > { %s1889_s25 = scalar_lea.sflag [#allocation9], %s1888_s22 }
 0xbf6   : > { %p2357_p0 = pnand %p2363_p13, %p2801_p9 }
 0xbf8   : > { %2572 = dma.done.wait (!%p2357_p0), %s1889_s25, 16  }
 0xbf9   : > { %2574 = vsyncadd (!%p2357_p0), %s1889_s25, 4294967280  ;;  %s1897_s3 = scalar_lea.sflag [#allocation11], %s1888_s22 }
 0xbfa   : > { %2576 = dma.done.wait (!%p2357_p0), %s1897_s3, 16  }
 0xbfb   : > { %2578 = vsyncadd (!%p2357_p0), %s1897_s3, 4294967280  ;;  %s38_s0 = sadd.s32 1, %s3256_s0   ;;  %s3259_s2 = sld [smem:[#allocation15_spill]] }
 0xbfc   : > { %p35_p1 = scmp.ge.s32.totalorder %s38_s0, 6   ;;  %s3260_s25 = sld [smem:[#allocation16_spill]] }
 0xbfd   : > { %s3261_s26 = sld [smem:[#allocation25_spill]]  ;;  %s3262_s27 = sld [smem:[#allocation18_spill]] }
 0xbfe   : > { %s3263_s3 = sld [smem:[#allocation19_spill]]  ;;  %s3264_s28 = sld [smem:[#allocation21_spill]] }
 0xbff   : > { %s3265_s29 = sld [smem:[#allocation23_spill]]  ;;  %37 = sbr.rel (!%p35_p1) target bundleno = 25 (0x19), region = 203 }
 0xc06   :  { %1901 = vsyncpa [#allocation9], 1 }
 0xc07   :  { %1903 = vsyncpa [#allocation9 + $0x1], 1 }
 0xc08   :  { %1904 = vsyncpa [#allocation11], 1 }
 0xc09   :  { %1906 = vsyncpa [#allocation11 + $0x1], 1 }

</bundles_post_ra>
